<compile_context>
chip_gen: v7x
topology: tpu7x:2x2x1
jax: 0.10.0
libtpu: 0.0.40
codegen_flags: <defaults>
</compile_context>

<pallas_src>
import jax
import jax.numpy as jnp
import numpy as np
from jax.experimental import pallas as pl
from jax.experimental.pallas import tpu as pltpu

HALO = 8  # sublane-aligned halo rows in the in-kernel padding scratch (>= max pad)

# Static conv configuration, in execution order.
_CONV_CFG = (
    dict(K=1, d=1, causal=False, relu=True),   # 0  stem.conv[0]   BasicConv1d(C, C, 1)
    dict(K=3, d=1, causal=False, relu=True),   # 1  stem.conv[1]   BasicConv1d(C, C, 3)
    dict(K=3, d=1, causal=False, relu=True),   # 2  branch_1[0]    BasicConv1d(C, C/2, 3)
    dict(K=3, d=1, causal=False, relu=True),   # 3  branch_1[1]    BasicConv1d(C/2, C/2, 3)
    dict(K=1, d=1, causal=False, relu=True),   # 4  branch_2[0]    BasicConv1d(C, C/2, 1)
    dict(K=2, d=1, causal=True,  relu=True),   # 5  TCN blk0 conv1 (weight-norm folded)
    dict(K=2, d=1, causal=True,  relu=True),   # 6  TCN blk0 conv2
    dict(K=1, d=1, causal=False, relu=False),  # 7  TCN blk0 downsample 1x1
    dict(K=2, d=2, causal=True,  relu=True),   # 8  TCN blk1 conv1
    dict(K=2, d=2, causal=True,  relu=True),   # 9  TCN blk1 conv2
    dict(K=1, d=1, causal=False, relu=False),  # 10 TCN blk1 downsample 1x1
    dict(K=1, d=1, causal=False, relu=True),   # 11 branch_2[2]    BasicConv1d(C/8, C/2, 1)
)


# ----------------------------------------------------------------------------
# Fused stem kernel: one grid step == one batch element, everything in VMEM.
# ----------------------------------------------------------------------------
def _stem_kernel(x_ref, *args):
    n_conv = len(_CONV_CFG)
    wrefs = args[0:2 * n_conv:2]          # (K, Cin, Cout), BN scale pre-folded
    brefs = args[1:2 * n_conv:2]          # (1, Cout)
    bn_s = args[2 * n_conv][...]          # (1, C)
    bn_b = args[2 * n_conv + 1][...]      # (1, C)
    o_ref = args[2 * n_conv + 2]          # (1, L, C)
    xpad_ref = args[2 * n_conv + 3]       # (L + 2*HALO, C) VMEM scratch

    L, C = x_ref.shape[1], x_ref.shape[2]

    # Zero the halo rows once; convs only ever write the central L rows.
    xpad_ref[0:HALO, :] = jnp.zeros((HALO, C), jnp.float32)
    xpad_ref[HALO + L:, :] = jnp.zeros((HALO, C), jnp.float32)

    def conv(x, idx):
        """Conv1d(+folded BN)+bias+activation as shifted (L,Cin)@(Cin,Cout) MXU matmuls."""
        cfg = _CONV_CFG[idx]
        K, d, causal = cfg["K"], cfg["d"], cfg["causal"]
        w_ref, b = wrefs[idx], brefs[idx][...]
        Lx, Cin = x.shape
        Cout = b.shape[-1]
        total = (K - 1) * d
        pad_l = total if causal else total // 2   # causal == Conv1d(pad=total)+Chomp
        if K == 1:
            acc = jnp.dot(x, w_ref[0], preferred_element_type=jnp.float32)
        else:
            # In-kernel zero padding via the scratch buffer (no host jnp.pad, no HBM).
            xpad_ref[HALO:HALO + Lx, 0:Cin] = x
            acc = jnp.zeros((Lx, Cout), jnp.float32)
            for k in range(K):                    # K <= 3: statically unrolled
                off = HALO - pad_l + k * d
                xs = xpad_ref[off:off + Lx, 0:Cin]
                acc = acc + jnp.dot(xs, w_ref[k],
                                    preferred_element_type=jnp.float32)
        y = acc + b
        if cfg["relu"]:
            y = jnp.maximum(y, 0.0)
        return y

    x = x_ref[0]                                   # (L, C) identity for the final add

    # stem.conv
    out = conv(conv(x, 0), 1)
    # branch_1
    x1 = conv(conv(out, 2), 3)
    # branch_2
    x2 = conv(out, 4)
    #   TemporalBlock 0 (k=2, dilation=1): relu(net(x) + downsample(x))
    h = conv(conv(x2, 5), 6)
    x2 = jnp.maximum(h + conv(x2, 7), 0.0)
    #   TemporalBlock 1 (k=2, dilation=2)
    h = conv(conv(x2, 8), 9)
    x2 = jnp.maximum(h + conv(x2, 10), 0.0)
    #   closing 1x1 BasicConv1d back to C/2
    x2 = conv(x2, 11)

    # cat([x1, x2]) -> bn1 -> hardswish -> + identity, fused; each branch result is
    # written straight into its channel half of the output (no concat buffer).
    half = C // 2

    def finish(z, c0, c1):
        y = z * bn_s[:, c0:c1] + bn_b[:, c0:c1]
        hsw = y * jnp.clip(y + 3.0, 0.0, 6.0) * (1.0 / 6.0)
        o_ref[0, :, c0:c1] = (hsw + x[:, c0:c1]).astype(o_ref.dtype)

    finish(x1, 0, half)
    finish(x2, half, C)
    # Dropout is identity in eval mode.


def _const_index_map(ndim):
    return lambda n: (0,) * ndim


def stem_forward(x, params):
    """x: (N, L, C)  ==  PyTorch (N, C, L) transposed to channels-last."""
    N, L, C = x.shape
    flat = []
    for i in range(len(_CONV_CFG)):
        flat.append(params["w"][i])
        flat.append(params["b"][i])
    flat.append(params["bn1_scale"])
    flat.append(params["bn1_shift"])

    in_specs = [pl.BlockSpec((1, L, C), lambda n: (n, 0, 0))]
    for a in flat:
        in_specs.append(pl.BlockSpec(a.shape, _const_index_map(a.ndim)))

    return pl.pallas_call(
        _stem_kernel,
        out_shape=jax.ShapeDtypeStruct((N, L, C), x.dtype),
        grid=(N,),
        in_specs=in_specs,
        out_specs=pl.BlockSpec((1, L, C), lambda n: (n, 0, 0)),
        scratch_shapes=[pltpu.VMEM((L + 2 * HALO, C), jnp.float32)],
        compiler_params=pltpu.CompilerParams(dimension_semantics=("parallel",)),
    )(x, *flat)


stem_forward_jit = jax.jit(stem_forward)


# ----------------------------------------------------------------------------
# Deterministic parameter construction (synthetic init, no checkpoint)
# ----------------------------------------------------------------------------
def _bn_fold(gamma, beta, mean, var, eps=1e-5):
    scale = gamma / jnp.sqrt(var + eps)
    shift = beta - mean * scale
    return scale, shift


def _basic_conv_params(key, cin, cout, k):
    kw, kg, kb, km, kv = jax.random.split(key, 5)
    w = jax.random.normal(kw, (k, cin, cout), jnp.float32) / np.sqrt(cin * k)
    gamma = 1.0 + 0.1 * jax.random.normal(kg, (cout,), jnp.float32)
    beta = 0.1 * jax.random.normal(kb, (cout,), jnp.float32)
    mean = 0.1 * jax.random.normal(km, (cout,), jnp.float32)
    var = 1.0 + 0.5 * jax.random.uniform(kv, (cout,), jnp.float32)
    s, b = _bn_fold(gamma, beta, mean, var)
    # Fold BN scale into the conv weight: epilogue is just add(shift)+activation.
    return w * s[None, None, :], b[None, :]


def _biased_conv_params(key, cin, cout, k):
    # Plain Conv1d with bias (weight-norm reparam folded into the weight).
    kw, kb = jax.random.split(key)
    w = jax.random.normal(kw, (k, cin, cout), jnp.float32) / np.sqrt(cin * k)
    bias = 0.1 * jax.random.normal(kb, (cout,), jnp.float32)
    return w, bias[None, :]


def make_stem_params(key, C):
    assert C % 8 == 0, "channels must be divisible by 8 (channels // 8 in branch_2)"
    keys = jax.random.split(key, 13)
    ws, bs = [], []

    def add(pair):
        ws.append(pair[0]); bs.append(pair[1])

    add(_basic_conv_params(keys[0], C, C, 1))                # 0  conv0
    add(_basic_conv_params(keys[1], C, C, 3))                # 1  conv1
    add(_basic_conv_params(keys[2], C, C // 2, 3))           # 2  b1_0
    add(_basic_conv_params(keys[3], C // 2, C // 2, 3))      # 3  b1_1
    add(_basic_conv_params(keys[4], C, C // 2, 1))           # 4  b2_0
    add(_biased_conv_params(keys[5], C // 2, C // 4, 2))     # 5  tcn0_c1
    add(_biased_conv_params(keys[6], C // 4, C // 4, 2))     # 6  tcn0_c2
    add(_biased_conv_params(keys[7], C // 2, C // 4, 1))     # 7  tcn0_ds
    add(_biased_conv_params(keys[8], C // 4, C // 8, 2))     # 8  tcn1_c1
    add(_biased_conv_params(keys[9], C // 8, C // 8, 2))     # 9  tcn1_c2
    add(_biased_conv_params(keys[10], C // 4, C // 8, 1))    # 10 tcn1_ds
    add(_basic_conv_params(keys[11], C // 8, C // 2, 1))     # 11 b2_2

    kg, kb, km, kv = jax.random.split(keys[12], 4)
    gamma = 1.0 + 0.1 * jax.random.normal(kg, (C,), jnp.float32)
    beta = 0.1 * jax.random.normal(kb, (C,), jnp.float32)
    mean = 0.1 * jax.random.normal(km, (C,), jnp.float32)
    var = 1.0 + 0.5 * jax.random.uniform(kv, (C,), jnp.float32)
    s, b = _bn_fold(gamma, beta, mean, var)
    return dict(w=ws, b=bs, bn1_scale=s[None, :], bn1_shift=b[None, :])


# ----------------------------------------------------------------------------
# Pure-JAX reference (same folded params) for a correctness self-check
# ----------------------------------------------------------------------------
def _ref_conv(x, w, b, d, causal, relu):
    N, L, Cin = x.shape
    K = w.shape[0]
    total = (K - 1) * d
    pad_l = total if causal else total // 2
    pad_r = 0 if causal else total - total // 2
    xp = jnp.pad(x, ((0, 0), (pad_l, pad_r), (0, 0)))
    acc = jnp.zeros((N, L, w.shape[2]), jnp.float32)
    for k in range(K):
        acc = acc + jnp.einsum("nlc,co->nlo", xp[:, k * d:k * d + L, :], w[k])
    y = acc + b
    return jnp.maximum(y, 0.0) if relu else y


def stem_reference(x, params):
    w, b = params["w"], params["b"]

    def c(z, i):
        cfg = _CONV_CFG[i]
        return _ref_conv(z, w[i], b[i], cfg["d"], cfg["causal"], cfg["relu"])

    out = c(c(x, 0), 1)
    x1 = c(c(out, 2), 3)
    x2 = c(out, 4)
    x2 = jnp.maximum(c(c(x2, 5), 6) + c(x2, 7), 0.0)
    x2 = jnp.maximum(c(c(x2, 8), 9) + c(x2, 10), 0.0)
    x2 = c(x2, 11)
    cat = jnp.concatenate([x1, x2], axis=-1)
    y = cat * params["bn1_scale"] + params["bn1_shift"]
    hsw = y * jnp.clip(y + 3.0, 0.0, 6.0) * (1.0 / 6.0)
    return hsw + x


# ----------------------------------------------------------------------------
if __name__ == "__main__":
    N, C, L = 2, 16, 16   # batch=2, channels=16 (divisible by 8), seq=16
    key = jax.random.PRNGKey(0)
    kx, kp = jax.random.split(key)

    x_ncl = jax.random.normal(kx, (N, C, L), jnp.float32)   # PyTorch (N, C, L) layout
    x = jnp.transpose(x_ncl, (0, 2, 1))                      # kernel layout (N, L, C)

    params = make_stem_params(kp, C)

    out = jax.block_until_ready(stem_forward_jit(x, params))
    assert out.shape == (N, L, C), out.shape
    assert bool(jnp.all(jnp.isfinite(out)))

    ref = stem_reference(x, params)
    max_err = float(jnp.max(jnp.abs(out - ref)))
    assert max_err < 1e-3, f"max abs err vs reference: {max_err}"

    print("KERNEL_OK")
</pallas_src>

<mosaic_0001>
module attributes {stable_mosaic.version = 11 : i64} {
  func.func @_stem_kernel(%arg0: i32, %arg1: memref<1x16x16xf32, #tpu.memory_space<vmem>>, %arg2: memref<1x16x16xf32, #tpu.memory_space<vmem>>, %arg3: memref<1x16xf32, #tpu.memory_space<vmem>>, %arg4: memref<3x16x16xf32, #tpu.memory_space<vmem>>, %arg5: memref<1x16xf32, #tpu.memory_space<vmem>>, %arg6: memref<3x16x8xf32, #tpu.memory_space<vmem>>, %arg7: memref<1x8xf32, #tpu.memory_space<vmem>>, %arg8: memref<3x8x8xf32, #tpu.memory_space<vmem>>, %arg9: memref<1x8xf32, #tpu.memory_space<vmem>>, %arg10: memref<1x16x8xf32, #tpu.memory_space<vmem>>, %arg11: memref<1x8xf32, #tpu.memory_space<vmem>>, %arg12: memref<2x8x4xf32, #tpu.memory_space<vmem>>, %arg13: memref<1x4xf32, #tpu.memory_space<vmem>>, %arg14: memref<2x4x4xf32, #tpu.memory_space<vmem>>, %arg15: memref<1x4xf32, #tpu.memory_space<vmem>>, %arg16: memref<1x8x4xf32, #tpu.memory_space<vmem>>, %arg17: memref<1x4xf32, #tpu.memory_space<vmem>>, %arg18: memref<2x4x2xf32, #tpu.memory_space<vmem>>, %arg19: memref<1x2xf32, #tpu.memory_space<vmem>>, %arg20: memref<2x2x2xf32, #tpu.memory_space<vmem>>, %arg21: memref<1x2xf32, #tpu.memory_space<vmem>>, %arg22: memref<1x4x2xf32, #tpu.memory_space<vmem>>, %arg23: memref<1x2xf32, #tpu.memory_space<vmem>>, %arg24: memref<1x2x8xf32, #tpu.memory_space<vmem>>, %arg25: memref<1x8xf32, #tpu.memory_space<vmem>>, %arg26: memref<1x16xf32, #tpu.memory_space<vmem>>, %arg27: memref<1x16xf32, #tpu.memory_space<vmem>>, %arg28: memref<1x16x16xf32, #tpu.memory_space<vmem>>, %arg29: memref<32x16xf32, #tpu.memory_space<vmem>>) attributes {dimension_semantics = [#tpu.dimension_semantics<parallel>], iteration_bounds = array<i64: 2>, scalar_prefetch = 0 : i64, scratch_operands = 1 : i64, tpu.core_type = #tpu.core_type<tc>, window_params = [{transform_indices = @transform_0, window_bounds = array<i64: 1, 16, 16>}, {pipeline_mode = #tpu.pipeline_mode<synchronous>, transform_indices = @transform_1, window_bounds = array<i64: 1, 16, 16>}, {pipeline_mode = #tpu.pipeline_mode<synchronous>, transform_indices = @transform_2, window_bounds = array<i64: 1, 16>}, {pipeline_mode = #tpu.pipeline_mode<synchronous>, transform_indices = @transform_3, window_bounds = array<i64: 3, 16, 16>}, {pipeline_mode = #tpu.pipeline_mode<synchronous>, transform_indices = @transform_4, window_bounds = array<i64: 1, 16>}, {pipeline_mode = #tpu.pipeline_mode<synchronous>, transform_indices = @transform_5, window_bounds = array<i64: 3, 16, 8>}, {pipeline_mode = #tpu.pipeline_mode<synchronous>, transform_indices = @transform_6, window_bounds = array<i64: 1, 8>}, {pipeline_mode = #tpu.pipeline_mode<synchronous>, transform_indices = @transform_7, window_bounds = array<i64: 3, 8, 8>}, {pipeline_mode = #tpu.pipeline_mode<synchronous>, transform_indices = @transform_8, window_bounds = array<i64: 1, 8>}, {pipeline_mode = #tpu.pipeline_mode<synchronous>, transform_indices = @transform_9, window_bounds = array<i64: 1, 16, 8>}, {pipeline_mode = #tpu.pipeline_mode<synchronous>, transform_indices = @transform_10, window_bounds = array<i64: 1, 8>}, {pipeline_mode = #tpu.pipeline_mode<synchronous>, transform_indices = @transform_11, window_bounds = array<i64: 2, 8, 4>}, {pipeline_mode = #tpu.pipeline_mode<synchronous>, transform_indices = @transform_12, window_bounds = array<i64: 1, 4>}, {pipeline_mode = #tpu.pipeline_mode<synchronous>, transform_indices = @transform_13, window_bounds = array<i64: 2, 4, 4>}, {pipeline_mode = #tpu.pipeline_mode<synchronous>, transform_indices = @transform_14, window_bounds = array<i64: 1, 4>}, {pipeline_mode = #tpu.pipeline_mode<synchronous>, transform_indices = @transform_15, window_bounds = array<i64: 1, 8, 4>}, {pipeline_mode = #tpu.pipeline_mode<synchronous>, transform_indices = @transform_16, window_bounds = array<i64: 1, 4>}, {pipeline_mode = #tpu.pipeline_mode<synchronous>, transform_indices = @transform_17, window_bounds = array<i64: 2, 4, 2>}, {pipeline_mode = #tpu.pipeline_mode<synchronous>, transform_indices = @transform_18, window_bounds = array<i64: 1, 2>}, {pipeline_mode = #tpu.pipeline_mode<synchronous>, transform_indices = @transform_19, window_bounds = array<i64: 2, 2, 2>}, {pipeline_mode = #tpu.pipeline_mode<synchronous>, transform_indices = @transform_20, window_bounds = array<i64: 1, 2>}, {pipeline_mode = #tpu.pipeline_mode<synchronous>, transform_indices = @transform_21, window_bounds = array<i64: 1, 4, 2>}, {pipeline_mode = #tpu.pipeline_mode<synchronous>, transform_indices = @transform_22, window_bounds = array<i64: 1, 2>}, {pipeline_mode = #tpu.pipeline_mode<synchronous>, transform_indices = @transform_23, window_bounds = array<i64: 1, 2, 8>}, {pipeline_mode = #tpu.pipeline_mode<synchronous>, transform_indices = @transform_24, window_bounds = array<i64: 1, 8>}, {pipeline_mode = #tpu.pipeline_mode<synchronous>, transform_indices = @transform_25, window_bounds = array<i64: 1, 16>}, {pipeline_mode = #tpu.pipeline_mode<synchronous>, transform_indices = @transform_26, window_bounds = array<i64: 1, 16>}, {transform_indices = @transform_27, window_bounds = array<i64: 1, 16, 16>}]} {
    %c0 = arith.constant 0 : index
    %c0_0 = arith.constant 0 : index
    %0 = vector.load %arg26[%c0, %c0_0] : memref<1x16xf32, #tpu.memory_space<vmem>>, vector<1x16xf32>
    %c0_1 = arith.constant 0 : index
    %c0_2 = arith.constant 0 : index
    %1 = vector.load %arg27[%c0_1, %c0_2] : memref<1x16xf32, #tpu.memory_space<vmem>>, vector<1x16xf32>
    %cst = arith.constant 0.000000e+00 : f32
    %2 = vector.broadcast %cst : f32 to vector<8x16xf32>
    %c0_3 = arith.constant 0 : index
    %c0_4 = arith.constant 0 : index
    %3 = vector.load %arg29[%c0_3, %c0_4] : memref<32x16xf32, #tpu.memory_space<vmem>>, vector<8x16xf32>
    tpu.vector_store %arg29[%c0_3, %c0_4], %2 {strides = array<i32>} : memref<32x16xf32, #tpu.memory_space<vmem>>, vector<8x16xf32>,
    %cst_5 = arith.constant 0.000000e+00 : f32
    %4 = vector.broadcast %cst_5 : f32 to vector<8x16xf32>
    %c24 = arith.constant 24 : index
    %c0_6 = arith.constant 0 : index
    %5 = vector.load %arg29[%c24, %c0_6] : memref<32x16xf32, #tpu.memory_space<vmem>>, vector<8x16xf32>
    tpu.vector_store %arg29[%c24, %c0_6], %4 {strides = array<i32>} : memref<32x16xf32, #tpu.memory_space<vmem>>, vector<8x16xf32>,
    %c0_7 = arith.constant 0 : index
    %c0_8 = arith.constant 0 : index
    %c0_9 = arith.constant 0 : index
    %6 = vector.load %arg1[%c0_7, %c0_8, %c0_9] : memref<1x16x16xf32, #tpu.memory_space<vmem>>, vector<1x16x16xf32>
    %7 = vector.shape_cast %6 : vector<1x16x16xf32> to vector<16x16xf32>
    %c0_10 = arith.constant 0 : index
    %c0_11 = arith.constant 0 : index
    %8 = vector.load %arg3[%c0_10, %c0_11] : memref<1x16xf32, #tpu.memory_space<vmem>>, vector<1x16xf32>
    %c0_12 = arith.constant 0 : index
    %c0_13 = arith.constant 0 : index
    %c0_14 = arith.constant 0 : index
    %9 = vector.load %arg2[%c0_12, %c0_13, %c0_14] : memref<1x16x16xf32, #tpu.memory_space<vmem>>, vector<1x16x16xf32>
    %10 = vector.shape_cast %9 : vector<1x16x16xf32> to vector<16x16xf32>
    %cst_15 = arith.constant dense<0.000000e+00> : vector<16x16xf32>
    %11 = tpu.matmul %7, %10, %cst_15 {dimension_numbers = #tpu.dot_dimension_numbers<[1], [0], [0], [1], [0, 0, 1, 1], [], []>} : vector<16x16xf32>, vector<16x16xf32>, vector<16x16xf32> -> vector<16x16xf32>
    %12 = vector.broadcast %8 : vector<1x16xf32> to vector<16x16xf32>
    %13 = arith.addf %11, %12 : vector<16x16xf32>
    %cst_16 = arith.constant 0.000000e+00 : f32
    %14 = vector.broadcast %cst_16 : f32 to vector<16x16xf32>
    %15 = arith.maximumf %13, %14 : vector<16x16xf32>
    %c0_17 = arith.constant 0 : index
    %c0_18 = arith.constant 0 : index
    %16 = vector.load %arg5[%c0_17, %c0_18] : memref<1x16xf32, #tpu.memory_space<vmem>>, vector<1x16xf32>
    %c8 = arith.constant 8 : index
    %c0_19 = arith.constant 0 : index
    %17 = vector.load %arg29[%c8, %c0_19] : memref<32x16xf32, #tpu.memory_space<vmem>>, vector<16x16xf32>
    tpu.vector_store %arg29[%c8, %c0_19], %15 {strides = array<i32>} : memref<32x16xf32, #tpu.memory_space<vmem>>, vector<16x16xf32>,
    %cst_20 = arith.constant 0.000000e+00 : f32
    %18 = vector.broadcast %cst_20 : f32 to vector<16x16xf32>
    %c7 = arith.constant 7 : index
    %c0_21 = arith.constant 0 : index
    %19 = vector.load %arg29[%c7, %c0_21] : memref<32x16xf32, #tpu.memory_space<vmem>>, vector<16x16xf32>
    %c0_22 = arith.constant 0 : index
    %c0_23 = arith.constant 0 : index
    %c0_24 = arith.constant 0 : index
    %20 = vector.load %arg4[%c0_22, %c0_23, %c0_24] : memref<3x16x16xf32, #tpu.memory_space<vmem>>, vector<1x16x16xf32>
    %21 = vector.shape_cast %20 : vector<1x16x16xf32> to vector<16x16xf32>
    %cst_25 = arith.constant dense<0.000000e+00> : vector<16x16xf32>
    %22 = tpu.matmul %19, %21, %cst_25 {dimension_numbers = #tpu.dot_dimension_numbers<[1], [0], [0], [1], [0, 0, 1, 1], [], []>} : vector<16x16xf32>, vector<16x16xf32>, vector<16x16xf32> -> vector<16x16xf32>
    %23 = arith.addf %18, %22 : vector<16x16xf32>
    %c8_26 = arith.constant 8 : index
    %c0_27 = arith.constant 0 : index
    %24 = vector.load %arg29[%c8_26, %c0_27] : memref<32x16xf32, #tpu.memory_space<vmem>>, vector<16x16xf32>
    %c1 = arith.constant 1 : index
    %c0_28 = arith.constant 0 : index
    %c0_29 = arith.constant 0 : index
    %25 = vector.load %arg4[%c1, %c0_28, %c0_29] : memref<3x16x16xf32, #tpu.memory_space<vmem>>, vector<1x16x16xf32>
    %26 = vector.shape_cast %25 : vector<1x16x16xf32> to vector<16x16xf32>
    %cst_30 = arith.constant dense<0.000000e+00> : vector<16x16xf32>
    %27 = tpu.matmul %24, %26, %cst_30 {dimension_numbers = #tpu.dot_dimension_numbers<[1], [0], [0], [1], [0, 0, 1, 1], [], []>} : vector<16x16xf32>, vector<16x16xf32>, vector<16x16xf32> -> vector<16x16xf32>
    %28 = arith.addf %23, %27 : vector<16x16xf32>
    %c9 = arith.constant 9 : index
    %c0_31 = arith.constant 0 : index
    %29 = vector.load %arg29[%c9, %c0_31] : memref<32x16xf32, #tpu.memory_space<vmem>>, vector<16x16xf32>
    %c2 = arith.constant 2 : index
    %c0_32 = arith.constant 0 : index
    %c0_33 = arith.constant 0 : index
    %30 = vector.load %arg4[%c2, %c0_32, %c0_33] : memref<3x16x16xf32, #tpu.memory_space<vmem>>, vector<1x16x16xf32>
    %31 = vector.shape_cast %30 : vector<1x16x16xf32> to vector<16x16xf32>
    %cst_34 = arith.constant dense<0.000000e+00> : vector<16x16xf32>
    %32 = tpu.matmul %29, %31, %cst_34 {dimension_numbers = #tpu.dot_dimension_numbers<[1], [0], [0], [1], [0, 0, 1, 1], [], []>} : vector<16x16xf32>, vector<16x16xf32>, vector<16x16xf32> -> vector<16x16xf32>
    %33 = arith.addf %28, %32 : vector<16x16xf32>
    %34 = vector.broadcast %16 : vector<1x16xf32> to vector<16x16xf32>
    %35 = arith.addf %33, %34 : vector<16x16xf32>
    %cst_35 = arith.constant 0.000000e+00 : f32
    %36 = vector.broadcast %cst_35 : f32 to vector<16x16xf32>
    %37 = arith.maximumf %35, %36 : vector<16x16xf32>
    %c0_36 = arith.constant 0 : index
    %c0_37 = arith.constant 0 : index
    %38 = vector.load %arg7[%c0_36, %c0_37] : memref<1x8xf32, #tpu.memory_space<vmem>>, vector<1x8xf32>
    %c8_38 = arith.constant 8 : index
    %c0_39 = arith.constant 0 : index
    %39 = vector.load %arg29[%c8_38, %c0_39] : memref<32x16xf32, #tpu.memory_space<vmem>>, vector<16x16xf32>
    tpu.vector_store %arg29[%c8_38, %c0_39], %37 {strides = array<i32>} : memref<32x16xf32, #tpu.memory_space<vmem>>, vector<16x16xf32>,
    %cst_40 = arith.constant 0.000000e+00 : f32
    %40 = vector.broadcast %cst_40 : f32 to vector<16x8xf32>
    %c7_41 = arith.constant 7 : index
    %c0_42 = arith.constant 0 : index
    %41 = vector.load %arg29[%c7_41, %c0_42] : memref<32x16xf32, #tpu.memory_space<vmem>>, vector<16x16xf32>
    %c0_43 = arith.constant 0 : index
    %c0_44 = arith.constant 0 : index
    %c0_45 = arith.constant 0 : index
    %42 = vector.load %arg6[%c0_43, %c0_44, %c0_45] : memref<3x16x8xf32, #tpu.memory_space<vmem>>, vector<1x16x8xf32>
    %43 = vector.shape_cast %42 : vector<1x16x8xf32> to vector<16x8xf32>
    %cst_46 = arith.constant dense<0.000000e+00> : vector<16x8xf32>
    %44 = tpu.matmul %41, %43, %cst_46 {dimension_numbers = #tpu.dot_dimension_numbers<[1], [0], [0], [1], [0, 0, 1, 1], [], []>} : vector<16x16xf32>, vector<16x8xf32>, vector<16x8xf32> -> vector<16x8xf32>
    %45 = arith.addf %40, %44 : vector<16x8xf32>
    %c8_47 = arith.constant 8 : index
    %c0_48 = arith.constant 0 : index
    %46 = vector.load %arg29[%c8_47, %c0_48] : memref<32x16xf32, #tpu.memory_space<vmem>>, vector<16x16xf32>
    %c1_49 = arith.constant 1 : index
    %c0_50 = arith.constant 0 : index
    %c0_51 = arith.constant 0 : index
    %47 = vector.load %arg6[%c1_49, %c0_50, %c0_51] : memref<3x16x8xf32, #tpu.memory_space<vmem>>, vector<1x16x8xf32>
    %48 = vector.shape_cast %47 : vector<1x16x8xf32> to vector<16x8xf32>
    %cst_52 = arith.constant dense<0.000000e+00> : vector<16x8xf32>
    %49 = tpu.matmul %46, %48, %cst_52 {dimension_numbers = #tpu.dot_dimension_numbers<[1], [0], [0], [1], [0, 0, 1, 1], [], []>} : vector<16x16xf32>, vector<16x8xf32>, vector<16x8xf32> -> vector<16x8xf32>
    %50 = arith.addf %45, %49 : vector<16x8xf32>
    %c9_53 = arith.constant 9 : index
    %c0_54 = arith.constant 0 : index
    %51 = vector.load %arg29[%c9_53, %c0_54] : memref<32x16xf32, #tpu.memory_space<vmem>>, vector<16x16xf32>
    %c2_55 = arith.constant 2 : index
    %c0_56 = arith.constant 0 : index
    %c0_57 = arith.constant 0 : index
    %52 = vector.load %arg6[%c2_55, %c0_56, %c0_57] : memref<3x16x8xf32, #tpu.memory_space<vmem>>, vector<1x16x8xf32>
    %53 = vector.shape_cast %52 : vector<1x16x8xf32> to vector<16x8xf32>
    %cst_58 = arith.constant dense<0.000000e+00> : vector<16x8xf32>
    %54 = tpu.matmul %51, %53, %cst_58 {dimension_numbers = #tpu.dot_dimension_numbers<[1], [0], [0], [1], [0, 0, 1, 1], [], []>} : vector<16x16xf32>, vector<16x8xf32>, vector<16x8xf32> -> vector<16x8xf32>
    %55 = arith.addf %50, %54 : vector<16x8xf32>
    %56 = vector.broadcast %38 : vector<1x8xf32> to vector<16x8xf32>
    %57 = arith.addf %55, %56 : vector<16x8xf32>
    %cst_59 = arith.constant 0.000000e+00 : f32
    %58 = vector.broadcast %cst_59 : f32 to vector<16x8xf32>
    %59 = arith.maximumf %57, %58 : vector<16x8xf32>
    %c0_60 = arith.constant 0 : index
    %c0_61 = arith.constant 0 : index
    %60 = vector.load %arg9[%c0_60, %c0_61] : memref<1x8xf32, #tpu.memory_space<vmem>>, vector<1x8xf32>
    %c8_62 = arith.constant 8 : index
    %c0_63 = arith.constant 0 : index
    %61 = vector.load %arg29[%c8_62, %c0_63] : memref<32x16xf32, #tpu.memory_space<vmem>>, vector<16x8xf32>
    tpu.vector_store %arg29[%c8_62, %c0_63], %59 {strides = array<i32>} : memref<32x16xf32, #tpu.memory_space<vmem>>, vector<16x8xf32>,
    %cst_64 = arith.constant 0.000000e+00 : f32
    %62 = vector.broadcast %cst_64 : f32 to vector<16x8xf32>
    %c7_65 = arith.constant 7 : index
    %c0_66 = arith.constant 0 : index
    %63 = vector.load %arg29[%c7_65, %c0_66] : memref<32x16xf32, #tpu.memory_space<vmem>>, vector<16x8xf32>
    %c0_67 = arith.constant 0 : index
    %c0_68 = arith.constant 0 : index
    %c0_69 = arith.constant 0 : index
    %64 = vector.load %arg8[%c0_67, %c0_68, %c0_69] : memref<3x8x8xf32, #tpu.memory_space<vmem>>, vector<1x8x8xf32>
    %65 = vector.shape_cast %64 : vector<1x8x8xf32> to vector<8x8xf32>
    %cst_70 = arith.constant dense<0.000000e+00> : vector<16x8xf32>
    %66 = tpu.matmul %63, %65, %cst_70 {dimension_numbers = #tpu.dot_dimension_numbers<[1], [0], [0], [1], [0, 0, 1, 1], [], []>} : vector<16x8xf32>, vector<8x8xf32>, vector<16x8xf32> -> vector<16x8xf32>
    %67 = arith.addf %62, %66 : vector<16x8xf32>
    %c8_71 = arith.constant 8 : index
    %c0_72 = arith.constant 0 : index
    %68 = vector.load %arg29[%c8_71, %c0_72] : memref<32x16xf32, #tpu.memory_space<vmem>>, vector<16x8xf32>
    %c1_73 = arith.constant 1 : index
    %c0_74 = arith.constant 0 : index
    %c0_75 = arith.constant 0 : index
    %69 = vector.load %arg8[%c1_73, %c0_74, %c0_75] : memref<3x8x8xf32, #tpu.memory_space<vmem>>, vector<1x8x8xf32>
    %70 = vector.shape_cast %69 : vector<1x8x8xf32> to vector<8x8xf32>
    %cst_76 = arith.constant dense<0.000000e+00> : vector<16x8xf32>
    %71 = tpu.matmul %68, %70, %cst_76 {dimension_numbers = #tpu.dot_dimension_numbers<[1], [0], [0], [1], [0, 0, 1, 1], [], []>} : vector<16x8xf32>, vector<8x8xf32>, vector<16x8xf32> -> vector<16x8xf32>
    %72 = arith.addf %67, %71 : vector<16x8xf32>
    %c9_77 = arith.constant 9 : index
    %c0_78 = arith.constant 0 : index
    %73 = vector.load %arg29[%c9_77, %c0_78] : memref<32x16xf32, #tpu.memory_space<vmem>>, vector<16x8xf32>
    %c2_79 = arith.constant 2 : index
    %c0_80 = arith.constant 0 : index
    %c0_81 = arith.constant 0 : index
    %74 = vector.load %arg8[%c2_79, %c0_80, %c0_81] : memref<3x8x8xf32, #tpu.memory_space<vmem>>, vector<1x8x8xf32>
    %75 = vector.shape_cast %74 : vector<1x8x8xf32> to vector<8x8xf32>
    %cst_82 = arith.constant dense<0.000000e+00> : vector<16x8xf32>
    %76 = tpu.matmul %73, %75, %cst_82 {dimension_numbers = #tpu.dot_dimension_numbers<[1], [0], [0], [1], [0, 0, 1, 1], [], []>} : vector<16x8xf32>, vector<8x8xf32>, vector<16x8xf32> -> vector<16x8xf32>
    %77 = arith.addf %72, %76 : vector<16x8xf32>
    %78 = vector.broadcast %60 : vector<1x8xf32> to vector<16x8xf32>
    %79 = arith.addf %77, %78 : vector<16x8xf32>
    %cst_83 = arith.constant 0.000000e+00 : f32
    %80 = vector.broadcast %cst_83 : f32 to vector<16x8xf32>
    %81 = arith.maximumf %79, %80 : vector<16x8xf32>
    %c0_84 = arith.constant 0 : index
    %c0_85 = arith.constant 0 : index
    %82 = vector.load %arg11[%c0_84, %c0_85] : memref<1x8xf32, #tpu.memory_space<vmem>>, vector<1x8xf32>
    %c0_86 = arith.constant 0 : index
    %c0_87 = arith.constant 0 : index
    %c0_88 = arith.constant 0 : index
    %83 = vector.load %arg10[%c0_86, %c0_87, %c0_88] : memref<1x16x8xf32, #tpu.memory_space<vmem>>, vector<1x16x8xf32>
    %84 = vector.shape_cast %83 : vector<1x16x8xf32> to vector<16x8xf32>
    %cst_89 = arith.constant dense<0.000000e+00> : vector<16x8xf32>
    %85 = tpu.matmul %37, %84, %cst_89 {dimension_numbers = #tpu.dot_dimension_numbers<[1], [0], [0], [1], [0, 0, 1, 1], [], []>} : vector<16x16xf32>, vector<16x8xf32>, vector<16x8xf32> -> vector<16x8xf32>
    %86 = vector.broadcast %82 : vector<1x8xf32> to vector<16x8xf32>
    %87 = arith.addf %85, %86 : vector<16x8xf32>
    %cst_90 = arith.constant 0.000000e+00 : f32
    %88 = vector.broadcast %cst_90 : f32 to vector<16x8xf32>
    %89 = arith.maximumf %87, %88 : vector<16x8xf32>
    %c0_91 = arith.constant 0 : index
    %c0_92 = arith.constant 0 : index
    %90 = vector.load %arg13[%c0_91, %c0_92] : memref<1x4xf32, #tpu.memory_space<vmem>>, vector<1x4xf32>
    %c8_93 = arith.constant 8 : index
    %c0_94 = arith.constant 0 : index
    %91 = vector.load %arg29[%c8_93, %c0_94] : memref<32x16xf32, #tpu.memory_space<vmem>>, vector<16x8xf32>
    tpu.vector_store %arg29[%c8_93, %c0_94], %89 {strides = array<i32>} : memref<32x16xf32, #tpu.memory_space<vmem>>, vector<16x8xf32>,
    %cst_95 = arith.constant 0.000000e+00 : f32
    %92 = vector.broadcast %cst_95 : f32 to vector<16x4xf32>
    %c7_96 = arith.constant 7 : index
    %c0_97 = arith.constant 0 : index
    %93 = vector.load %arg29[%c7_96, %c0_97] : memref<32x16xf32, #tpu.memory_space<vmem>>, vector<16x8xf32>
    %c0_98 = arith.constant 0 : index
    %c0_99 = arith.constant 0 : index
    %c0_100 = arith.constant 0 : index
    %94 = vector.load %arg12[%c0_98, %c0_99, %c0_100] : memref<2x8x4xf32, #tpu.memory_space<vmem>>, vector<1x8x4xf32>
    %95 = vector.shape_cast %94 : vector<1x8x4xf32> to vector<8x4xf32>
    %cst_101 = arith.constant dense<0.000000e+00> : vector<16x4xf32>
    %96 = tpu.matmul %93, %95, %cst_101 {dimension_numbers = #tpu.dot_dimension_numbers<[1], [0], [0], [1], [0, 0, 1, 1], [], []>} : vector<16x8xf32>, vector<8x4xf32>, vector<16x4xf32> -> vector<16x4xf32>
    %97 = arith.addf %92, %96 : vector<16x4xf32>
    %c8_102 = arith.constant 8 : index
    %c0_103 = arith.constant 0 : index
    %98 = vector.load %arg29[%c8_102, %c0_103] : memref<32x16xf32, #tpu.memory_space<vmem>>, vector<16x8xf32>
    %c1_104 = arith.constant 1 : index
    %c0_105 = arith.constant 0 : index
    %c0_106 = arith.constant 0 : index
    %99 = vector.load %arg12[%c1_104, %c0_105, %c0_106] : memref<2x8x4xf32, #tpu.memory_space<vmem>>, vector<1x8x4xf32>
    %100 = vector.shape_cast %99 : vector<1x8x4xf32> to vector<8x4xf32>
    %cst_107 = arith.constant dense<0.000000e+00> : vector<16x4xf32>
    %101 = tpu.matmul %98, %100, %cst_107 {dimension_numbers = #tpu.dot_dimension_numbers<[1], [0], [0], [1], [0, 0, 1, 1], [], []>} : vector<16x8xf32>, vector<8x4xf32>, vector<16x4xf32> -> vector<16x4xf32>
    %102 = arith.addf %97, %101 : vector<16x4xf32>
    %103 = vector.broadcast %90 : vector<1x4xf32> to vector<16x4xf32>
    %104 = arith.addf %102, %103 : vector<16x4xf32>
    %cst_108 = arith.constant 0.000000e+00 : f32
    %105 = vector.broadcast %cst_108 : f32 to vector<16x4xf32>
    %106 = arith.maximumf %104, %105 : vector<16x4xf32>
    %c0_109 = arith.constant 0 : index
    %c0_110 = arith.constant 0 : index
    %107 = vector.load %arg15[%c0_109, %c0_110] : memref<1x4xf32, #tpu.memory_space<vmem>>, vector<1x4xf32>
    %c8_111 = arith.constant 8 : index
    %c0_112 = arith.constant 0 : index
    %108 = vector.load %arg29[%c8_111, %c0_112] : memref<32x16xf32, #tpu.memory_space<vmem>>, vector<16x4xf32>
    tpu.vector_store %arg29[%c8_111, %c0_112], %106 {strides = array<i32>} : memref<32x16xf32, #tpu.memory_space<vmem>>, vector<16x4xf32>,
    %cst_113 = arith.constant 0.000000e+00 : f32
    %109 = vector.broadcast %cst_113 : f32 to vector<16x4xf32>
    %c7_114 = arith.constant 7 : index
    %c0_115 = arith.constant 0 : index
    %110 = vector.load %arg29[%c7_114, %c0_115] : memref<32x16xf32, #tpu.memory_space<vmem>>, vector<16x4xf32>
    %c0_116 = arith.constant 0 : index
    %c0_117 = arith.constant 0 : index
    %c0_118 = arith.constant 0 : index
    %111 = vector.load %arg14[%c0_116, %c0_117, %c0_118] : memref<2x4x4xf32, #tpu.memory_space<vmem>>, vector<1x4x4xf32>
    %112 = vector.shape_cast %111 : vector<1x4x4xf32> to vector<4x4xf32>
    %cst_119 = arith.constant dense<0.000000e+00> : vector<16x4xf32>
    %113 = tpu.matmul %110, %112, %cst_119 {dimension_numbers = #tpu.dot_dimension_numbers<[1], [0], [0], [1], [0, 0, 1, 1], [], []>} : vector<16x4xf32>, vector<4x4xf32>, vector<16x4xf32> -> vector<16x4xf32>
    %114 = arith.addf %109, %113 : vector<16x4xf32>
    %c8_120 = arith.constant 8 : index
    %c0_121 = arith.constant 0 : index
    %115 = vector.load %arg29[%c8_120, %c0_121] : memref<32x16xf32, #tpu.memory_space<vmem>>, vector<16x4xf32>
    %c1_122 = arith.constant 1 : index
    %c0_123 = arith.constant 0 : index
    %c0_124 = arith.constant 0 : index
    %116 = vector.load %arg14[%c1_122, %c0_123, %c0_124] : memref<2x4x4xf32, #tpu.memory_space<vmem>>, vector<1x4x4xf32>
    %117 = vector.shape_cast %116 : vector<1x4x4xf32> to vector<4x4xf32>
    %cst_125 = arith.constant dense<0.000000e+00> : vector<16x4xf32>
    %118 = tpu.matmul %115, %117, %cst_125 {dimension_numbers = #tpu.dot_dimension_numbers<[1], [0], [0], [1], [0, 0, 1, 1], [], []>} : vector<16x4xf32>, vector<4x4xf32>, vector<16x4xf32> -> vector<16x4xf32>
    %119 = arith.addf %114, %118 : vector<16x4xf32>
    %120 = vector.broadcast %107 : vector<1x4xf32> to vector<16x4xf32>
    %121 = arith.addf %119, %120 : vector<16x4xf32>
    %cst_126 = arith.constant 0.000000e+00 : f32
    %122 = vector.broadcast %cst_126 : f32 to vector<16x4xf32>
    %123 = arith.maximumf %121, %122 : vector<16x4xf32>
    %c0_127 = arith.constant 0 : index
    %c0_128 = arith.constant 0 : index
    %124 = vector.load %arg17[%c0_127, %c0_128] : memref<1x4xf32, #tpu.memory_space<vmem>>, vector<1x4xf32>
    %c0_129 = arith.constant 0 : index
    %c0_130 = arith.constant 0 : index
    %c0_131 = arith.constant 0 : index
    %125 = vector.load %arg16[%c0_129, %c0_130, %c0_131] : memref<1x8x4xf32, #tpu.memory_space<vmem>>, vector<1x8x4xf32>
    %126 = vector.shape_cast %125 : vector<1x8x4xf32> to vector<8x4xf32>
    %cst_132 = arith.constant dense<0.000000e+00> : vector<16x4xf32>
    %127 = tpu.matmul %89, %126, %cst_132 {dimension_numbers = #tpu.dot_dimension_numbers<[1], [0], [0], [1], [0, 0, 1, 1], [], []>} : vector<16x8xf32>, vector<8x4xf32>, vector<16x4xf32> -> vector<16x4xf32>
    %128 = vector.broadcast %124 : vector<1x4xf32> to vector<16x4xf32>
    %129 = arith.addf %127, %128 : vector<16x4xf32>
    %130 = arith.addf %123, %129 : vector<16x4xf32>
    %cst_133 = arith.constant 0.000000e+00 : f32
    %131 = vector.broadcast %cst_133 : f32 to vector<16x4xf32>
    %132 = arith.maximumf %130, %131 : vector<16x4xf32>
    %c0_134 = arith.constant 0 : index
    %c0_135 = arith.constant 0 : index
    %133 = vector.load %arg19[%c0_134, %c0_135] : memref<1x2xf32, #tpu.memory_space<vmem>>, vector<1x2xf32>
    %c8_136 = arith.constant 8 : index
    %c0_137 = arith.constant 0 : index
    %134 = vector.load %arg29[%c8_136, %c0_137] : memref<32x16xf32, #tpu.memory_space<vmem>>, vector<16x4xf32>
    tpu.vector_store %arg29[%c8_136, %c0_137], %132 {strides = array<i32>} : memref<32x16xf32, #tpu.memory_space<vmem>>, vector<16x4xf32>,
    %cst_138 = arith.constant 0.000000e+00 : f32
    %135 = vector.broadcast %cst_138 : f32 to vector<16x2xf32>
    %c6 = arith.constant 6 : index
    %c0_139 = arith.constant 0 : index
    %136 = vector.load %arg29[%c6, %c0_139] : memref<32x16xf32, #tpu.memory_space<vmem>>, vector<16x4xf32>
    %c0_140 = arith.constant 0 : index
    %c0_141 = arith.constant 0 : index
    %c0_142 = arith.constant 0 : index
    %137 = vector.load %arg18[%c0_140, %c0_141, %c0_142] : memref<2x4x2xf32, #tpu.memory_space<vmem>>, vector<1x4x2xf32>
    %138 = vector.shape_cast %137 : vector<1x4x2xf32> to vector<4x2xf32>
    %cst_143 = arith.constant dense<0.000000e+00> : vector<16x2xf32>
    %139 = tpu.matmul %136, %138, %cst_143 {dimension_numbers = #tpu.dot_dimension_numbers<[1], [0], [0], [1], [0, 0, 1, 1], [], []>} : vector<16x4xf32>, vector<4x2xf32>, vector<16x2xf32> -> vector<16x2xf32>
    %140 = arith.addf %135, %139 : vector<16x2xf32>
    %c8_144 = arith.constant 8 : index
    %c0_145 = arith.constant 0 : index
    %141 = vector.load %arg29[%c8_144, %c0_145] : memref<32x16xf32, #tpu.memory_space<vmem>>, vector<16x4xf32>
    %c1_146 = arith.constant 1 : index
    %c0_147 = arith.constant 0 : index
    %c0_148 = arith.constant 0 : index
    %142 = vector.load %arg18[%c1_146, %c0_147, %c0_148] : memref<2x4x2xf32, #tpu.memory_space<vmem>>, vector<1x4x2xf32>
    %143 = vector.shape_cast %142 : vector<1x4x2xf32> to vector<4x2xf32>
    %cst_149 = arith.constant dense<0.000000e+00> : vector<16x2xf32>
    %144 = tpu.matmul %141, %143, %cst_149 {dimension_numbers = #tpu.dot_dimension_numbers<[1], [0], [0], [1], [0, 0, 1, 1], [], []>} : vector<16x4xf32>, vector<4x2xf32>, vector<16x2xf32> -> vector<16x2xf32>
    %145 = arith.addf %140, %144 : vector<16x2xf32>
    %146 = vector.broadcast %133 : vector<1x2xf32> to vector<16x2xf32>
    %147 = arith.addf %145, %146 : vector<16x2xf32>
    %cst_150 = arith.constant 0.000000e+00 : f32
    %148 = vector.broadcast %cst_150 : f32 to vector<16x2xf32>
    %149 = arith.maximumf %147, %148 : vector<16x2xf32>
    %c0_151 = arith.constant 0 : index
    %c0_152 = arith.constant 0 : index
    %150 = vector.load %arg21[%c0_151, %c0_152] : memref<1x2xf32, #tpu.memory_space<vmem>>, vector<1x2xf32>
    %c8_153 = arith.constant 8 : index
    %c0_154 = arith.constant 0 : index
    %151 = vector.load %arg29[%c8_153, %c0_154] : memref<32x16xf32, #tpu.memory_space<vmem>>, vector<16x2xf32>
    tpu.vector_store %arg29[%c8_153, %c0_154], %149 {strides = array<i32>} : memref<32x16xf32, #tpu.memory_space<vmem>>, vector<16x2xf32>,
    %cst_155 = arith.constant 0.000000e+00 : f32
    %152 = vector.broadcast %cst_155 : f32 to vector<16x2xf32>
    %c6_156 = arith.constant 6 : index
    %c0_157 = arith.constant 0 : index
    %153 = vector.load %arg29[%c6_156, %c0_157] : memref<32x16xf32, #tpu.memory_space<vmem>>, vector<16x2xf32>
    %c0_158 = arith.constant 0 : index
    %c0_159 = arith.constant 0 : index
    %c0_160 = arith.constant 0 : index
    %154 = vector.load %arg20[%c0_158, %c0_159, %c0_160] : memref<2x2x2xf32, #tpu.memory_space<vmem>>, vector<1x2x2xf32>
    %155 = vector.shape_cast %154 : vector<1x2x2xf32> to vector<2x2xf32>
    %cst_161 = arith.constant dense<0.000000e+00> : vector<16x2xf32>
    %156 = tpu.matmul %153, %155, %cst_161 {dimension_numbers = #tpu.dot_dimension_numbers<[1], [0], [0], [1], [0, 0, 1, 1], [], []>} : vector<16x2xf32>, vector<2x2xf32>, vector<16x2xf32> -> vector<16x2xf32>
    %157 = arith.addf %152, %156 : vector<16x2xf32>
    %c8_162 = arith.constant 8 : index
    %c0_163 = arith.constant 0 : index
    %158 = vector.load %arg29[%c8_162, %c0_163] : memref<32x16xf32, #tpu.memory_space<vmem>>, vector<16x2xf32>
    %c1_164 = arith.constant 1 : index
    %c0_165 = arith.constant 0 : index
    %c0_166 = arith.constant 0 : index
    %159 = vector.load %arg20[%c1_164, %c0_165, %c0_166] : memref<2x2x2xf32, #tpu.memory_space<vmem>>, vector<1x2x2xf32>
    %160 = vector.shape_cast %159 : vector<1x2x2xf32> to vector<2x2xf32>
    %cst_167 = arith.constant dense<0.000000e+00> : vector<16x2xf32>
    %161 = tpu.matmul %158, %160, %cst_167 {dimension_numbers = #tpu.dot_dimension_numbers<[1], [0], [0], [1], [0, 0, 1, 1], [], []>} : vector<16x2xf32>, vector<2x2xf32>, vector<16x2xf32> -> vector<16x2xf32>
    %162 = arith.addf %157, %161 : vector<16x2xf32>
    %163 = vector.broadcast %150 : vector<1x2xf32> to vector<16x2xf32>
    %164 = arith.addf %162, %163 : vector<16x2xf32>
    %cst_168 = arith.constant 0.000000e+00 : f32
    %165 = vector.broadcast %cst_168 : f32 to vector<16x2xf32>
    %166 = arith.maximumf %164, %165 : vector<16x2xf32>
    %c0_169 = arith.constant 0 : index
    %c0_170 = arith.constant 0 : index
    %167 = vector.load %arg23[%c0_169, %c0_170] : memref<1x2xf32, #tpu.memory_space<vmem>>, vector<1x2xf32>
    %c0_171 = arith.constant 0 : index
    %c0_172 = arith.constant 0 : index
    %c0_173 = arith.constant 0 : index
    %168 = vector.load %arg22[%c0_171, %c0_172, %c0_173] : memref<1x4x2xf32, #tpu.memory_space<vmem>>, vector<1x4x2xf32>
    %169 = vector.shape_cast %168 : vector<1x4x2xf32> to vector<4x2xf32>
    %cst_174 = arith.constant dense<0.000000e+00> : vector<16x2xf32>
    %170 = tpu.matmul %132, %169, %cst_174 {dimension_numbers = #tpu.dot_dimension_numbers<[1], [0], [0], [1], [0, 0, 1, 1], [], []>} : vector<16x4xf32>, vector<4x2xf32>, vector<16x2xf32> -> vector<16x2xf32>
    %171 = vector.broadcast %167 : vector<1x2xf32> to vector<16x2xf32>
    %172 = arith.addf %170, %171 : vector<16x2xf32>
    %173 = arith.addf %166, %172 : vector<16x2xf32>
    %cst_175 = arith.constant 0.000000e+00 : f32
    %174 = vector.broadcast %cst_175 : f32 to vector<16x2xf32>
    %175 = arith.maximumf %173, %174 : vector<16x2xf32>
    %c0_176 = arith.constant 0 : index
    %c0_177 = arith.constant 0 : index
    %176 = vector.load %arg25[%c0_176, %c0_177] : memref<1x8xf32, #tpu.memory_space<vmem>>, vector<1x8xf32>
    %c0_178 = arith.constant 0 : index
    %c0_179 = arith.constant 0 : index
    %c0_180 = arith.constant 0 : index
    %177 = vector.load %arg24[%c0_178, %c0_179, %c0_180] : memref<1x2x8xf32, #tpu.memory_space<vmem>>, vector<1x2x8xf32>
    %178 = vector.shape_cast %177 : vector<1x2x8xf32> to vector<2x8xf32>
    %cst_181 = arith.constant dense<0.000000e+00> : vector<16x8xf32>
    %179 = tpu.matmul %175, %178, %cst_181 {dimension_numbers = #tpu.dot_dimension_numbers<[1], [0], [0], [1], [0, 0, 1, 1], [], []>} : vector<16x2xf32>, vector<2x8xf32>, vector<16x8xf32> -> vector<16x8xf32>
    %180 = vector.broadcast %176 : vector<1x8xf32> to vector<16x8xf32>
    %181 = arith.addf %179, %180 : vector<16x8xf32>
    %cst_182 = arith.constant 0.000000e+00 : f32
    %182 = vector.broadcast %cst_182 : f32 to vector<16x8xf32>
    %183 = arith.maximumf %181, %182 : vector<16x8xf32>
    %184 = vector.extract_strided_slice %0 {offsets = [0, 0], sizes = [1, 8], strides = [1, 1]} : vector<1x16xf32> to vector<1x8xf32>
    %185 = vector.broadcast %184 : vector<1x8xf32> to vector<16x8xf32>
    %186 = arith.mulf %81, %185 : vector<16x8xf32>
    %187 = vector.extract_strided_slice %1 {offsets = [0, 0], sizes = [1, 8], strides = [1, 1]} : vector<1x16xf32> to vector<1x8xf32>
    %188 = vector.broadcast %187 : vector<1x8xf32> to vector<16x8xf32>
    %189 = arith.addf %186, %188 : vector<16x8xf32>
    %cst_183 = arith.constant 3.000000e+00 : f32
    %190 = vector.broadcast %cst_183 : f32 to vector<16x8xf32>
    %191 = arith.addf %189, %190 : vector<16x8xf32>
    %cst_184 = arith.constant 0.000000e+00 : f32
    %cst_185 = arith.constant 6.000000e+00 : f32
    %192 = vector.broadcast %cst_184 : f32 to vector<16x8xf32>
    %193 = arith.maximumf %192, %191 : vector<16x8xf32>
    %194 = vector.broadcast %cst_185 : f32 to vector<16x8xf32>
    %195 = arith.minimumf %194, %193 : vector<16x8xf32>
    %196 = arith.mulf %189, %195 : vector<16x8xf32>
    %cst_186 = arith.constant 0.166666672 : f32
    %197 = vector.broadcast %cst_186 : f32 to vector<16x8xf32>
    %198 = arith.mulf %196, %197 : vector<16x8xf32>
    %199 = vector.extract_strided_slice %7 {offsets = [0, 0], sizes = [16, 8], strides = [1, 1]} : vector<16x16xf32> to vector<16x8xf32>
    %200 = arith.addf %198, %199 : vector<16x8xf32>
    %c0_187 = arith.constant 0 : index
    %c0_188 = arith.constant 0 : index
    %c0_189 = arith.constant 0 : index
    %201 = vector.load %arg28[%c0_187, %c0_188, %c0_189] : memref<1x16x16xf32, #tpu.memory_space<vmem>>, vector<1x16x8xf32>
    %202 = vector.shape_cast %201 : vector<1x16x8xf32> to vector<16x8xf32>
    %203 = vector.shape_cast %200 : vector<16x8xf32> to vector<1x16x8xf32>
    tpu.vector_store %arg28[%c0_187, %c0_188, %c0_189], %203 {strides = array<i32>} : memref<1x16x16xf32, #tpu.memory_space<vmem>>, vector<1x16x8xf32>,
    %204 = vector.extract_strided_slice %0 {offsets = [0, 8], sizes = [1, 8], strides = [1, 1]} : vector<1x16xf32> to vector<1x8xf32>
    %205 = vector.broadcast %204 : vector<1x8xf32> to vector<16x8xf32>
    %206 = arith.mulf %183, %205 : vector<16x8xf32>
    %207 = vector.extract_strided_slice %1 {offsets = [0, 8], sizes = [1, 8], strides = [1, 1]} : vector<1x16xf32> to vector<1x8xf32>
    %208 = vector.broadcast %207 : vector<1x8xf32> to vector<16x8xf32>
    %209 = arith.addf %206, %208 : vector<16x8xf32>
    %cst_190 = arith.constant 3.000000e+00 : f32
    %210 = vector.broadcast %cst_190 : f32 to vector<16x8xf32>
    %211 = arith.addf %209, %210 : vector<16x8xf32>
    %cst_191 = arith.constant 0.000000e+00 : f32
    %cst_192 = arith.constant 6.000000e+00 : f32
    %212 = vector.broadcast %cst_191 : f32 to vector<16x8xf32>
    %213 = arith.maximumf %212, %211 : vector<16x8xf32>
    %214 = vector.broadcast %cst_192 : f32 to vector<16x8xf32>
    %215 = arith.minimumf %214, %213 : vector<16x8xf32>
    %216 = arith.mulf %209, %215 : vector<16x8xf32>
    %cst_193 = arith.constant 0.166666672 : f32
    %217 = vector.broadcast %cst_193 : f32 to vector<16x8xf32>
    %218 = arith.mulf %216, %217 : vector<16x8xf32>
    %219 = vector.extract_strided_slice %7 {offsets = [0, 8], sizes = [16, 8], strides = [1, 1]} : vector<16x16xf32> to vector<16x8xf32>
    %220 = arith.addf %218, %219 : vector<16x8xf32>
    %c0_194 = arith.constant 0 : index
    %c0_195 = arith.constant 0 : index
    %c8_196 = arith.constant 8 : index
    %221 = vector.load %arg28[%c0_194, %c0_195, %c8_196] : memref<1x16x16xf32, #tpu.memory_space<vmem>>, vector<1x16x8xf32>
    %222 = vector.shape_cast %221 : vector<1x16x8xf32> to vector<16x8xf32>
    %223 = vector.shape_cast %220 : vector<16x8xf32> to vector<1x16x8xf32>
    tpu.vector_store %arg28[%c0_194, %c0_195, %c8_196], %223 {strides = array<i32>} : memref<1x16x16xf32, #tpu.memory_space<vmem>>, vector<1x16x8xf32>,
    return
  }
  func.func @transform_0(%arg0: i32) -> (i32, i32, i32) {
    %c0_i32 = arith.constant 0 : i32
    %c0_i32_0 = arith.constant 0 : i32
    %c0_i32_1 = arith.constant 0 : i32
    return %arg0, %c0_i32, %c0_i32_0 : i32, i32, i32
  }
  func.func @transform_1(%arg0: i32) -> (i32, i32, i32) {
    %c0_i32 = arith.constant 0 : i32
    %c0_i32_0 = arith.constant 0 : i32
    %c0_i32_1 = arith.constant 0 : i32
    %c0_i32_2 = arith.constant 0 : i32
    return %c0_i32, %c0_i32_0, %c0_i32_1 : i32, i32, i32
  }
  func.func @transform_2(%arg0: i32) -> (i32, i32) {
    %c0_i32 = arith.constant 0 : i32
    %c0_i32_0 = arith.constant 0 : i32
    %c0_i32_1 = arith.constant 0 : i32
    return %c0_i32, %c0_i32_0 : i32, i32
  }
  func.func @transform_3(%arg0: i32) -> (i32, i32, i32) {
    %c0_i32 = arith.constant 0 : i32
    %c0_i32_0 = arith.constant 0 : i32
    %c0_i32_1 = arith.constant 0 : i32
    %c0_i32_2 = arith.constant 0 : i32
    return %c0_i32, %c0_i32_0, %c0_i32_1 : i32, i32, i32
  }
  func.func @transform_4(%arg0: i32) -> (i32, i32) {
    %c0_i32 = arith.constant 0 : i32
    %c0_i32_0 = arith.constant 0 : i32
    %c0_i32_1 = arith.constant 0 : i32
    return %c0_i32, %c0_i32_0 : i32, i32
  }
  func.func @transform_5(%arg0: i32) -> (i32, i32, i32) {
    %c0_i32 = arith.constant 0 : i32
    %c0_i32_0 = arith.constant 0 : i32
    %c0_i32_1 = arith.constant 0 : i32
    %c0_i32_2 = arith.constant 0 : i32
    return %c0_i32, %c0_i32_0, %c0_i32_1 : i32, i32, i32
  }
  func.func @transform_6(%arg0: i32) -> (i32, i32) {
    %c0_i32 = arith.constant 0 : i32
    %c0_i32_0 = arith.constant 0 : i32
    %c0_i32_1 = arith.constant 0 : i32
    return %c0_i32, %c0_i32_0 : i32, i32
  }
  func.func @transform_7(%arg0: i32) -> (i32, i32, i32) {
    %c0_i32 = arith.constant 0 : i32
    %c0_i32_0 = arith.constant 0 : i32
    %c0_i32_1 = arith.constant 0 : i32
    %c0_i32_2 = arith.constant 0 : i32
    return %c0_i32, %c0_i32_0, %c0_i32_1 : i32, i32, i32
  }
  func.func @transform_8(%arg0: i32) -> (i32, i32) {
    %c0_i32 = arith.constant 0 : i32
    %c0_i32_0 = arith.constant 0 : i32
    %c0_i32_1 = arith.constant 0 : i32
    return %c0_i32, %c0_i32_0 : i32, i32
  }
  func.func @transform_9(%arg0: i32) -> (i32, i32, i32) {
    %c0_i32 = arith.constant 0 : i32
    %c0_i32_0 = arith.constant 0 : i32
    %c0_i32_1 = arith.constant 0 : i32
    %c0_i32_2 = arith.constant 0 : i32
    return %c0_i32, %c0_i32_0, %c0_i32_1 : i32, i32, i32
  }
  func.func @transform_10(%arg0: i32) -> (i32, i32) {
    %c0_i32 = arith.constant 0 : i32
    %c0_i32_0 = arith.constant 0 : i32
    %c0_i32_1 = arith.constant 0 : i32
    return %c0_i32, %c0_i32_0 : i32, i32
  }
  func.func @transform_11(%arg0: i32) -> (i32, i32, i32) {
    %c0_i32 = arith.constant 0 : i32
    %c0_i32_0 = arith.constant 0 : i32
    %c0_i32_1 = arith.constant 0 : i32
    %c0_i32_2 = arith.constant 0 : i32
    return %c0_i32, %c0_i32_0, %c0_i32_1 : i32, i32, i32
  }
  func.func @transform_12(%arg0: i32) -> (i32, i32) {
    %c0_i32 = arith.constant 0 : i32
    %c0_i32_0 = arith.constant 0 : i32
    %c0_i32_1 = arith.constant 0 : i32
    return %c0_i32, %c0_i32_0 : i32, i32
  }
  func.func @transform_13(%arg0: i32) -> (i32, i32, i32) {
    %c0_i32 = arith.constant 0 : i32
    %c0_i32_0 = arith.constant 0 : i32
    %c0_i32_1 = arith.constant 0 : i32
    %c0_i32_2 = arith.constant 0 : i32
    return %c0_i32, %c0_i32_0, %c0_i32_1 : i32, i32, i32
  }
  func.func @transform_14(%arg0: i32) -> (i32, i32) {
    %c0_i32 = arith.constant 0 : i32
    %c0_i32_0 = arith.constant 0 : i32
    %c0_i32_1 = arith.constant 0 : i32
    return %c0_i32, %c0_i32_0 : i32, i32
  }
  func.func @transform_15(%arg0: i32) -> (i32, i32, i32) {
    %c0_i32 = arith.constant 0 : i32
    %c0_i32_0 = arith.constant 0 : i32
    %c0_i32_1 = arith.constant 0 : i32
    %c0_i32_2 = arith.constant 0 : i32
    return %c0_i32, %c0_i32_0, %c0_i32_1 : i32, i32, i32
  }
  func.func @transform_16(%arg0: i32) -> (i32, i32) {
    %c0_i32 = arith.constant 0 : i32
    %c0_i32_0 = arith.constant 0 : i32
    %c0_i32_1 = arith.constant 0 : i32
    return %c0_i32, %c0_i32_0 : i32, i32
  }
  func.func @transform_17(%arg0: i32) -> (i32, i32, i32) {
    %c0_i32 = arith.constant 0 : i32
    %c0_i32_0 = arith.constant 0 : i32
    %c0_i32_1 = arith.constant 0 : i32
    %c0_i32_2 = arith.constant 0 : i32
    return %c0_i32, %c0_i32_0, %c0_i32_1 : i32, i32, i32
  }
  func.func @transform_18(%arg0: i32) -> (i32, i32) {
    %c0_i32 = arith.constant 0 : i32
    %c0_i32_0 = arith.constant 0 : i32
    %c0_i32_1 = arith.constant 0 : i32
    return %c0_i32, %c0_i32_0 : i32, i32
  }
  func.func @transform_19(%arg0: i32) -> (i32, i32, i32) {
    %c0_i32 = arith.constant 0 : i32
    %c0_i32_0 = arith.constant 0 : i32
    %c0_i32_1 = arith.constant 0 : i32
    %c0_i32_2 = arith.constant 0 : i32
    return %c0_i32, %c0_i32_0, %c0_i32_1 : i32, i32, i32
  }
  func.func @transform_20(%arg0: i32) -> (i32, i32) {
    %c0_i32 = arith.constant 0 : i32
    %c0_i32_0 = arith.constant 0 : i32
    %c0_i32_1 = arith.constant 0 : i32
    return %c0_i32, %c0_i32_0 : i32, i32
  }
  func.func @transform_21(%arg0: i32) -> (i32, i32, i32) {
    %c0_i32 = arith.constant 0 : i32
    %c0_i32_0 = arith.constant 0 : i32
    %c0_i32_1 = arith.constant 0 : i32
    %c0_i32_2 = arith.constant 0 : i32
    return %c0_i32, %c0_i32_0, %c0_i32_1 : i32, i32, i32
  }
  func.func @transform_22(%arg0: i32) -> (i32, i32) {
    %c0_i32 = arith.constant 0 : i32
    %c0_i32_0 = arith.constant 0 : i32
    %c0_i32_1 = arith.constant 0 : i32
    return %c0_i32, %c0_i32_0 : i32, i32
  }
  func.func @transform_23(%arg0: i32) -> (i32, i32, i32) {
    %c0_i32 = arith.constant 0 : i32
    %c0_i32_0 = arith.constant 0 : i32
    %c0_i32_1 = arith.constant 0 : i32
    %c0_i32_2 = arith.constant 0 : i32
    return %c0_i32, %c0_i32_0, %c0_i32_1 : i32, i32, i32
  }
  func.func @transform_24(%arg0: i32) -> (i32, i32) {
    %c0_i32 = arith.constant 0 : i32
    %c0_i32_0 = arith.constant 0 : i32
    %c0_i32_1 = arith.constant 0 : i32
    return %c0_i32, %c0_i32_0 : i32, i32
  }
  func.func @transform_25(%arg0: i32) -> (i32, i32) {
    %c0_i32 = arith.constant 0 : i32
    %c0_i32_0 = arith.constant 0 : i32
    %c0_i32_1 = arith.constant 0 : i32
    return %c0_i32, %c0_i32_0 : i32, i32
  }
  func.func @transform_26(%arg0: i32) -> (i32, i32) {
    %c0_i32 = arith.constant 0 : i32
    %c0_i32_0 = arith.constant 0 : i32
    %c0_i32_1 = arith.constant 0 : i32
    return %c0_i32, %c0_i32_0 : i32, i32
  }
  func.func @transform_27(%arg0: i32) -> (i32, i32, i32) {
    %c0_i32 = arith.constant 0 : i32
    %c0_i32_0 = arith.constant 0 : i32
    %c0_i32_1 = arith.constant 0 : i32
    return %arg0, %c0_i32, %c0_i32_0 : i32, i32, i32
  }
}

</mosaic_0001>

<bundles_post_ra>
// kernel: stem_forward.1
= control target key start
LH: loop header
LB: loop body
LE: loop exit
PB: predicated region body
PF: predicated region fallthrough
CT: control target
= control target key end

     0   :  { %s4728_s0 = inlined_call_operand.vmem [shape: f32[2,16,16], index: 0, kind: input, shape index: {}]   ;;  %s4729_s1 = inlined_call_operand.vmem [shape: f32[1,16,16], index: 1, kind: input, shape index: {}]   ;;  %s4730_s2 = inlined_call_operand.hbm [shape: f32[1,16], index: 2, kind: input, shape index: {}]   ;;  %s4731_s3 = inlined_call_operand.vmem [shape: f32[3,16,16], index: 3, kind: input, shape index: {}]   ;;  %s4732_s4 = inlined_call_operand.hbm [shape: f32[1,16], index: 4, kind: input, shape index: {}]   ;;  %s4733_s5 = inlined_call_operand.vmem [shape: f32[3,16,8], index: 5, kind: input, shape index: {}]   ;;  %s4734_s6 = inlined_call_operand.hbm [shape: f32[1,8], index: 6, kind: input, shape index: {}]   ;;  %s4735_s7 = inlined_call_operand.vmem [shape: f32[3,8,8], index: 7, kind: input, shape index: {}]   ;;  %s4736_s8 = inlined_call_operand.hbm [shape: f32[1,8], index: 8, kind: input, shape index: {}]   ;;  %s4737_s9 = inlined_call_operand.vmem [shape: f32[1,16,8], index: 9, kind: input, shape index: {}]   ;;  %s4738_s10 = inlined_call_operand.hbm [shape: f32[1,8], index: 10, kind: input, shape index: {}]   ;;  %s4739_s11 = inlined_call_operand.vmem [shape: f32[2,8,4], index: 11, kind: input, shape index: {}]   ;;  %s4740_s12 = inlined_call_operand.hbm [shape: f32[1,4], index: 12, kind: input, shape index: {}]   ;;  %s4741_s13 = inlined_call_operand.vmem [shape: f32[2,4,4], index: 13, kind: input, shape index: {}]   ;;  %s4742_s14 = inlined_call_operand.hbm [shape: f32[1,4], index: 14, kind: input, shape index: {}]   ;;  %s4743_s15 = inlined_call_operand.vmem [shape: f32[1,8,4], index: 15, kind: input, shape index: {}]   ;;  %s4744_s16 = inlined_call_operand.hbm [shape: f32[1,4], index: 16, kind: input, shape index: {}]   ;;  %s4745_s17 = inlined_call_operand.vmem [shape: f32[2,4,2], index: 17, kind: input, shape index: {}]   ;;  %s4746_s18 = inlined_call_operand.hbm [shape: f32[1,2], index: 18, kind: input, shape index: {}]   ;;  %s4747_s19 = inlined_call_operand.vmem [shape: f32[2,2,2], index: 19, kind: input, shape index: {}]   ;;  %s4748_s20 = inlined_call_operand.vmem [shape: f32[1,2], index: 20, kind: input, shape index: {}]   ;;  %s4749_s21 = inlined_call_operand.vmem [shape: f32[1,4,2], index: 21, kind: input, shape index: {}]   ;;  %s4750_s22 = inlined_call_operand.vmem [shape: f32[1,2], index: 22, kind: input, shape index: {}]   ;;  %s4751_s23 = inlined_call_operand.vmem [shape: f32[1,2,8], index: 23, kind: input, shape index: {}]   ;;  %s4752_s24 = inlined_call_operand.vmem [shape: f32[1,8], index: 24, kind: input, shape index: {}]   ;;  %s4753_s25 = inlined_call_operand.vmem [shape: f32[1,16], index: 25, kind: input, shape index: {}]   ;;  %s4754_s26 = inlined_call_operand.vmem [shape: f32[1,16], index: 26, kind: input, shape index: {}]   ;;  %s4755_s27 = inlined_call_operand.hbm [shape: f32[2,16,16], index: 27, kind: output, shape index: {}]  }
   0x1   :  { %4786 = sst [smem:[#allocation32_spill]] %s4728_s0 }
   0x2   :  { %4787 = sst [smem:[#allocation33_spill]] %s4729_s1 }
   0x3   :  { %4788 = sst [smem:[#allocation34_spill]] %s4730_s2 }
   0x4   :  { %4789 = sst [smem:[#allocation35_spill]] %s4731_s3 }
   0x5   :  { %4790 = sst [smem:[#allocation36_spill]] %s4732_s4 }
   0x6   :  { %4791 = sst [smem:[#allocation37_spill]] %s4733_s5 }
   0x7   :  { %4792 = sst [smem:[#allocation38_spill]] %s4734_s6 }
   0x8   :  { %4793 = sst [smem:[#allocation39_spill]] %s4735_s7 }
   0x9   :  { %4794 = sst [smem:[#allocation40_spill]] %s4736_s8 }
   0xa   :  { %4795 = sst [smem:[#allocation41_spill]] %s4737_s9 }
   0xb   :  { %4796 = sst [smem:[#allocation42_spill]] %s4738_s10 }
   0xc   :  { %4797 = sst [smem:[#allocation43_spill]] %s4739_s11 }
   0xd   :  { %4798 = sst [smem:[#allocation44_spill]] %s4740_s12 }
   0xe   :  { %4799 = sst [smem:[#allocation45_spill]] %s4744_s16 }
   0xf   :  { %4800 = sst [smem:[#allocation46_spill]] %s4748_s20 }
  0x10   :  { %4801 = sst [smem:[#allocation47_spill]] %s4750_s22 }
  0x11   :  { %4802 = sst [smem:[#allocation48_spill]] %s4752_s24 }
  0x12   :  { %4803 = sst [smem:[#allocation49_spill]] %s4755_s27 }
  0x13   :  { %32 = vsyncpa [#allocation4], 0 }
  0x14   :  { %33 = vsyncpa [#allocation7], 0 }
  0x15   :  { %34 = vsyncpa [#allocation10], 0 }
  0x16   :  { %35 = vsyncpa [#allocation13], 0 }
  0x17   :  { %36 = vsyncpa [#allocation16], 0 }
  0x18   :  { %37 = vsyncpa [#allocation5], 0 }
  0x19   :  { %39 = vsyncpa [#allocation5 + $0x1], 0  ;;  %s4189_s7 = smov 0   ;;  %s4191_s4 = smov 0  }
  0x1a   :  { %s4193_s8 = smov 0   ;;  %s4195_s30 = smov 0  }
  0x1b LB: > { %4804 = sst [smem:[#allocation25_spill]] %s4021_s7  ;;  %s4210_s9 = sadd.s32 4294967295, %s4033_s30   ;;  %s4033_s30 = sphi %s4195_s30, %s4857_s30   ;;  %s4029_s8 = sphi %s4193_s8, %s4862_s8   ;;  %s4025_s4 = sphi %s4191_s4, %s4861_s4   ;;  %s4021_s7 = sphi %s4189_s7, %s4860_s7  }
  0x1c   : > { %4805 = sst [smem:[#allocation26_spill]] %s4029_s8  ;;  %s3201_s5 = sadd.s32 4294967294, %s4033_s30  }
  0x1d   : > { %4806 = sst [smem:[#allocation27_spill]] %s4033_s30  ;;  %s4214_s28 = sadd.s32 1, %s4033_s30  }
  0x1e   : > { %4807 = sst [smem:[#allocation28_spill]] %s4214_s28  ;;  %s624_s0 = sadd.s32 1, %s4029_s8 }
  0x1f   : > { %s621_s10 = ssub.s32 %s4033_s30, %s4214_s28  ;;  %p634_p0 = scmp.ne.s32.totalorder %s4029_s8, %s4025_s4 }
  0x20   : > { %p622_p1 = scmp.eq.s32.totalorder %s621_s10, 0  ;;  %p635_p2 = scmp.eq.s32.totalorder %s4210_s9, 1 }
  0x21   : > { %p640_p3 = scmp.ne.s32.totalorder %s4025_s4, %s4021_s7  ;;  %p641_p4 = scmp.eq.s32.totalorder %s3201_s5, 1 }
  0x22   : > { %s4225_s29 = scalar_select %p622_p1, %s4029_s8, %s624_s0  }
  0x23   : > { %p4227_p5 = por %p635_p2, %p634_p0  ;;  %p4231_p6 = por %p641_p4, %p640_p3 }
  0x24   : > { %4808 = sst [smem:[#allocation29_spill]] %s4225_s29  ;;  %p3202_p7 = scmp.ge.s32.totalorder %s4033_s30, 1 }
  0x25   : > { %s4809_s1 = scalar_select %p4227_p5, 1, 0 }
  0x26   : > { %s4811_s6 = scalar_select %p4231_p6, 1, 0 }
  0x27   : > { %4810 = sst [smem:[#allocation30_spill]] %s4809_s1  ;;  %p648_p8 = scmp.lt.s32.totalorder %s4033_s30, 3 }
  0x28   : > { %4812 = sst [smem:[#allocation31_spill]] %s4811_s6  ;;  %p4776_p9 = scmp.eq.s32.totalorder %s4210_s9, 0 }
  0x29   : > { %p4238_p10 = pnand %p3202_p7, %p648_p8  ;;  %s4035_s2 = smov [#allocation6]  }
  0x2a   : > { %s678_s3 = sshll.u32 %s4035_s2, 4  ;;  %s4036_s5 = smov [#allocation9]   ;;  %s679_s3 = int_to_ptr.vmem [resolvable:$true] %s678_s3 }
  0x2b   : > { %s4813_s11 = scalar_select %p4238_p10, 1, 0 }
  0x2c   : > { %p3603_p11 = pneg %p4238_p10  ;;  %s706_s0 = sshll.u32 %s4036_s5, 4  ;;  %s4250_s0 = int_to_ptr.vmem [resolvable:$true] %s706_s0 }
  0x2d   : > { %s4037_s29 = smov [#allocation12]   ;;  %s4815_s2 = sld [smem:[#allocation36_spill]] }
  0x2e   : > { %p4246_p12 = pnand %p4776_p9, %p3603_p11  ;;  %s734_s8 = sshll.u32 %s4037_s29, 4  ;;  %s4252_s8 = int_to_ptr.vmem [resolvable:$true] %s734_s8 }
  0x30   : > { %p4262_p0 = pneg %p4246_p12 }
  0x33   : > { %s3699_s7 = scalar_lea.hbm %s4815_s2, 16 }
  0x34   : > { %p3700_p13 = scmp.ne.s32.totalorder %s4815_s2, %s3699_s7  ;;  %p3706_p3 = scmp.lt.u32.totalorder %s3699_s7, %s4815_s2 }
  0x36   : > { %p3702_p1 = pnand %p4262_p0, %p3700_p13 }
  0x38   : > { %p3703_p2 = pneg %p3702_p1 }
  0x3a   : > { %p3708_p4 = pnand %p3706_p3, %p3703_p2 }
  0x3c   : > { %3711 = shalt.err (!%p3708_p4)
}
  0x3d   : > { %s3712_s28 = scalar_lea.vmem %s679_s3, 16  ;;  %s3719_s27 = scalar_lea.vmem %s679_s3, 32 }
  0x3e   : > { %p3713_p7 = scmp.ne.s32.totalorder %s679_s3, %s3712_s28  ;;  %p3720_p9 = scmp.lt.s32.totalorder %s679_s3, %s679_s3 }
  0x3f   : > { %p3721_p6 = scmp.lt.s32.totalorder %s3719_s27, %s3712_s28 }
  0x40   : > { %p3715_p8 = pnand %p3713_p7, %p4262_p0 }
  0x41   : > { %p3722_p5 = por %p3721_p6, %p3720_p9 }
  0x42   : > { %p3716_p11 = pneg %p3715_p8 }
  0x44   : > { %p3723_p10 = pnand %p3722_p5, %p3716_p11 }
  0x46   : > { %3726 = shalt.err (!%p3723_p10)
}
  0x47   : > { %3609 = dma.hbm_to_vmem [thread:$0]  (!%p4246_p12), %s4815_s2, 16, %s679_s3, [#allocation7]  }
  0x48   : > { %s4817_s29 = sld [smem:[#allocation40_spill]] }
  0x4e   : > { %s3727_s24 = scalar_lea.hbm %s4817_s29, 16 }
  0x4f   : > { %p3728_p13 = scmp.ne.s32.totalorder %s4817_s29, %s3727_s24  ;;  %p3734_p5 = scmp.lt.u32.totalorder %s3727_s24, %s4817_s29 }
  0x51   : > { %p3730_p1 = pnand %p3728_p13, %p4262_p0 }
  0x53   : > { %p3731_p6 = pneg %p3730_p1 }
  0x55   : > { %p3736_p9 = pnand %p3734_p5, %p3731_p6 }
  0x57   : > { %3739 = shalt.err (!%p3736_p9)
}
  0x58   : > { %s3740_s3 = scalar_lea.vmem %s4250_s0, 16  ;;  %s3747_s20 = scalar_lea.vmem %s4250_s0, 32 }
  0x59   : > { %p3741_p10 = scmp.ne.s32.totalorder %s4250_s0, %s3740_s3  ;;  %p3748_p4 = scmp.lt.s32.totalorder %s4250_s0, %s4250_s0 }
  0x5a   : > { %p3749_p7 = scmp.lt.s32.totalorder %s3747_s20, %s3740_s3 }
  0x5b   : > { %p3743_p2 = pnand %p3741_p10, %p4262_p0 }
  0x5c   : > { %p3750_p8 = por %p3749_p7, %p3748_p4 }
  0x5d   : > { %p3744_p3 = pneg %p3743_p2 }
  0x5f   : > { %p3751_p11 = pnand %p3750_p8, %p3744_p3 }
  0x61   : > { %3754 = shalt.err (!%p3751_p11)
}
  0x62   : > { %3615 = dma.hbm_to_vmem [thread:$0]  (!%p4246_p12), %s4817_s29, 16, %s4250_s0, [#allocation10]  }
  0x63   : > { %s4818_s12 = sld [smem:[#allocation44_spill]] }
  0x69   : > { %s3755_s7 = scalar_lea.hbm %s4818_s12, 16 }
  0x6a   : > { %p3756_p13 = scmp.ne.s32.totalorder %s4818_s12, %s3755_s7  ;;  %p3762_p5 = scmp.lt.u32.totalorder %s3755_s7, %s4818_s12 }
  0x6c   : > { %p3758_p1 = pnand %p3756_p13, %p4262_p0 }
  0x6e   : > { %p3759_p6 = pneg %p3758_p1 }
  0x70   : > { %p3764_p9 = pnand %p3762_p5, %p3759_p6 }
  0x72   : > { %3767 = shalt.err (!%p3764_p9)
}
  0x73   : > { %s3768_s0 = scalar_lea.vmem %s4252_s8, 16  ;;  %s3775_s20 = scalar_lea.vmem %s4252_s8, 32 }
  0x74   : > { %p3769_p10 = scmp.ne.s32.totalorder %s4252_s8, %s3768_s0  ;;  %p3776_p4 = scmp.lt.s32.totalorder %s4252_s8, %s4252_s8 }
  0x75   : > { %p3777_p7 = scmp.lt.s32.totalorder %s3775_s20, %s3768_s0 }
  0x76   : > { %p3771_p2 = pnand %p3769_p10, %p4262_p0 }
  0x77   : > { %p3778_p8 = por %p3777_p7, %p3776_p4 }
  0x78   : > { %p3772_p3 = pneg %p3771_p2 }
  0x7a   : > { %p3779_p11 = pnand %p3778_p8, %p3772_p3 }
  0x7c   : > { %3782 = shalt.err (!%p3779_p11)
}
  0x7d   : > { %3621 = dma.hbm_to_vmem [thread:$0]  (!%p4246_p12), %s4818_s12, 16, %s4252_s8, [#allocation13]  }
  0x7e   : > { %s4038_s30 = smov [#allocation15]   ;;  %s4039_s7 = smov [#allocation3]  }
  0x7f   : > { %s762_s6 = sshll.u32 %s4038_s30, 4  ;;  %s664_s1 = sshll.u32 %s4039_s7, 4  ;;  %s763_s6 = int_to_ptr.vmem [resolvable:$true] %s762_s6  ;;  %s665_s1 = int_to_ptr.vmem [resolvable:$true] %s664_s1 }
  0x80   : > { %s4819_s16 = sld [smem:[#allocation45_spill]] }
  0x86   : > { %s3783_s3 = scalar_lea.hbm %s4819_s16, 16 }
  0x87   : > { %p3784_p13 = scmp.ne.s32.totalorder %s4819_s16, %s3783_s3  ;;  %p3790_p5 = scmp.lt.u32.totalorder %s3783_s3, %s4819_s16 }
  0x89   : > { %p3786_p1 = pnand %p3784_p13, %p4262_p0 }
  0x8b   : > { %p3787_p6 = pneg %p3786_p1 }
  0x8d   : > { %p3792_p9 = pnand %p3790_p5, %p3787_p6 }
  0x8f   : > { %3795 = shalt.err (!%p3792_p9)
}
  0x90   : > { %s3796_s8 = scalar_lea.vmem %s763_s6, 16  ;;  %s3803_s24 = scalar_lea.vmem %s763_s6, 32 }
  0x91   : > { %p3797_p10 = scmp.ne.s32.totalorder %s763_s6, %s3796_s8  ;;  %p3804_p4 = scmp.lt.s32.totalorder %s763_s6, %s763_s6 }
  0x92   : > { %p3805_p7 = scmp.lt.s32.totalorder %s3803_s24, %s3796_s8 }
  0x93   : > { %p3799_p2 = pnand %p3797_p10, %p4262_p0 }
  0x94   : > { %p3806_p8 = por %p3805_p7, %p3804_p4 }
  0x95   : > { %p3800_p3 = pneg %p3799_p2 }
  0x97   : > { %p3807_p11 = pnand %p3806_p8, %p3800_p3 }
  0x99   : > { %3810 = shalt.err (!%p3807_p11)
}
  0x9a   : > { %3627 = dma.hbm_to_vmem [thread:$0]  (!%p4246_p12), %s4819_s16, 16, %s763_s6, [#allocation16]  }
  0x9b   : > { %s4820_s27 = sld [smem:[#allocation34_spill]] }
  0xa1   : > { %s3811_s3 = scalar_lea.hbm %s4820_s27, 16 }
  0xa2   : > { %p3812_p13 = scmp.ne.s32.totalorder %s4820_s27, %s3811_s3  ;;  %p3818_p5 = scmp.lt.u32.totalorder %s3811_s3, %s4820_s27 }
  0xa4   : > { %p3814_p1 = pnand %p3812_p13, %p4262_p0 }
  0xa6   : > { %p3815_p6 = pneg %p3814_p1 }
  0xa8   : > { %p3820_p9 = pnand %p3818_p5, %p3815_p6 }
  0xaa   : > { %3823 = shalt.err (!%p3820_p9)
}
  0xab   : > { %s3824_s24 = scalar_lea.vmem %s665_s1, 16  ;;  %s3831_s6 = scalar_lea.vmem %s665_s1, 32 }
  0xac   : > { %p3825_p10 = scmp.ne.s32.totalorder %s665_s1, %s3824_s24  ;;  %p3832_p4 = scmp.lt.s32.totalorder %s665_s1, %s665_s1 }
  0xad   : > { %p3833_p7 = scmp.lt.s32.totalorder %s3831_s6, %s3824_s24 }
  0xae   : > { %p3827_p2 = pnand %p3825_p10, %p4262_p0 }
  0xaf   : > { %p3834_p8 = por %p3833_p7, %p3832_p4 }
  0xb0   : > { %p3828_p3 = pneg %p3827_p2 }
  0xb2   : > { %p3835_p11 = pnand %p3834_p8, %p3828_p3 }
  0xb4   : > { %3838 = shalt.err (!%p3835_p11)
}
  0xb5   : > { %3606 = dma.hbm_to_vmem [thread:$0]  (!%p4246_p12), %s4820_s27, 16, %s665_s1, [#allocation4]  }
  0xb6   : > { %s4040_s2 = smov [#allocation8]   ;;  %s4041_s3 = smov [#allocation11]  }
  0xb7   : > { %s692_s28 = sshll.u32 %s4040_s2, 4  ;;  %s720_s0 = sshll.u32 %s4041_s3, 4  ;;  %s693_s28 = int_to_ptr.vmem [resolvable:$true] %s692_s28  ;;  %s721_s0 = int_to_ptr.vmem [resolvable:$true] %s720_s0 }
  0xb8   : > { %s4821_s8 = sld [smem:[#allocation38_spill]] }
  0xbe   : > { %s4822_s12 = smov %s4821_s8  ;;  %s3839_s16 = scalar_lea.hbm %s4821_s8, 16 }
  0xbf   : > { %p3840_p13 = scmp.ne.s32.totalorder %s4822_s12, %s3839_s16  ;;  %p3846_p5 = scmp.lt.u32.totalorder %s3839_s16, %s4822_s12 }
  0xc1   : > { %p3842_p1 = pnand %p3840_p13, %p4262_p0 }
  0xc3   : > { %p3843_p6 = pneg %p3842_p1 }
  0xc5   : > { %p3848_p9 = pnand %p3846_p5, %p3843_p6 }
  0xc7   : > { %3851 = shalt.err (!%p3848_p9)
}
  0xc8   : > { %s3852_s1 = scalar_lea.vmem %s693_s28, 16  ;;  %s3859_s7 = scalar_lea.vmem %s693_s28, 32 }
  0xc9   : > { %p3853_p10 = scmp.ne.s32.totalorder %s693_s28, %s3852_s1  ;;  %p3860_p4 = scmp.lt.s32.totalorder %s693_s28, %s693_s28 }
  0xca   : > { %p3861_p7 = scmp.lt.s32.totalorder %s3859_s7, %s3852_s1 }
  0xcb   : > { %p3855_p2 = pnand %p3853_p10, %p4262_p0 }
  0xcc   : > { %p3862_p8 = por %p3861_p7, %p3860_p4 }
  0xcd   : > { %p3856_p3 = pneg %p3855_p2 }
  0xcf   : > { %p3863_p11 = pnand %p3862_p8, %p3856_p3 }
  0xd1   : > { %3866 = shalt.err (!%p3863_p11)
}
  0xd2   : > { %3612 = dma.hbm_to_vmem [thread:$0]  (!%p4246_p12), %s4822_s12, 16, %s693_s28, [#allocation7]  }
  0xd3   : > { %s4823_s20 = sld [smem:[#allocation42_spill]] }
  0xd9   : > { %s3867_s22 = scalar_lea.hbm %s4823_s20, 16 }
  0xda   : > { %p3868_p13 = scmp.ne.s32.totalorder %s4823_s20, %s3867_s22  ;;  %p3874_p5 = scmp.lt.u32.totalorder %s3867_s22, %s4823_s20 }
  0xdc   : > { %p3870_p1 = pnand %p3868_p13, %p4262_p0 }
  0xde   : > { %p3871_p6 = pneg %p3870_p1 }
  0xe0   : > { %p3876_p9 = pnand %p3874_p5, %p3871_p6 }
  0xe2   : > { %3879 = shalt.err (!%p3876_p9)
}
  0xe3   : > { %s3880_s1 = scalar_lea.vmem %s721_s0, 16  ;;  %s3887_s28 = scalar_lea.vmem %s721_s0, 32 }
  0xe4   : > { %p3881_p10 = scmp.ne.s32.totalorder %s721_s0, %s3880_s1  ;;  %p3888_p4 = scmp.lt.s32.totalorder %s721_s0, %s721_s0 }
  0xe5   : > { %p3889_p7 = scmp.lt.s32.totalorder %s3887_s28, %s3880_s1 }
  0xe6   : > { %p3883_p2 = pnand %p3881_p10, %p4262_p0 }
  0xe7   : > { %p3890_p8 = por %p3889_p7, %p3888_p4 }
  0xe8   : > { %p3884_p3 = pneg %p3883_p2 }
  0xea   : > { %p3891_p11 = pnand %p3890_p8, %p3884_p3 }
  0xec   : > { %3894 = shalt.err (!%p3891_p11)
}
  0xed   : > { %3618 = dma.hbm_to_vmem [thread:$0]  (!%p4246_p12), %s4823_s20, 16, %s721_s0, [#allocation10]  }
  0xee   : > { %s4042_s3 = smov [#allocation14]   ;;  %s4043_s29 = smov [#allocation17]  }
  0xef   : > { %s748_s16 = sshll.u32 %s4042_s3, 4  ;;  %s776_s22 = sshll.u32 %s4043_s29, 4  ;;  %s749_s16 = int_to_ptr.vmem [resolvable:$true] %s748_s16  ;;  %s777_s22 = int_to_ptr.vmem [resolvable:$true] %s776_s22 }
  0xf0   : > { %s3895_s6 = scalar_lea.hbm %s4742_s14, 16 }
  0xf1   : > { %p3896_p13 = scmp.ne.s32.totalorder %s4742_s14, %s3895_s6  ;;  %p3902_p5 = scmp.lt.u32.totalorder %s3895_s6, %s4742_s14 }
  0xf3   : > { %p3898_p1 = pnand %p3896_p13, %p4262_p0 }
  0xf5   : > { %p3899_p6 = pneg %p3898_p1 }
  0xf7   : > { %p3904_p9 = pnand %p3902_p5, %p3899_p6 }
  0xf9   : > { %3907 = shalt.err (!%p3904_p9)
}
  0xfa   : > { %s3908_s0 = scalar_lea.vmem %s749_s16, 16  ;;  %s3915_s2 = scalar_lea.vmem %s749_s16, 32 }
  0xfb   : > { %p3909_p10 = scmp.ne.s32.totalorder %s749_s16, %s3908_s0  ;;  %p3916_p4 = scmp.lt.s32.totalorder %s749_s16, %s749_s16 }
  0xfc   : > { %p3917_p7 = scmp.lt.s32.totalorder %s3915_s2, %s3908_s0 }
  0xfd   : > { %p3911_p2 = pnand %p3909_p10, %p4262_p0 }
  0xfe   : > { %p3918_p8 = por %p3917_p7, %p3916_p4 }
  0xff   : > { %p3912_p3 = pneg %p3911_p2 }
 0x101   : > { %p3919_p11 = pnand %p3918_p8, %p3912_p3 }
 0x103   : > { %3922 = shalt.err (!%p3919_p11)
}
 0x104   : > { %3624 = dma.hbm_to_vmem [thread:$0]  (!%p4246_p12), %s4742_s14, 16, %s749_s16, [#allocation13]  }
 0x105   : > { %s3923_s6 = scalar_lea.hbm %s4746_s18, 16 }
 0x106   : > { %p3924_p13 = scmp.ne.s32.totalorder %s4746_s18, %s3923_s6  ;;  %p3930_p5 = scmp.lt.u32.totalorder %s3923_s6, %s4746_s18 }
 0x108   : > { %p3926_p1 = pnand %p3924_p13, %p4262_p0 }
 0x10a   : > { %p3927_p6 = pneg %p3926_p1 }
 0x10c   : > { %p3932_p9 = pnand %p3930_p5, %p3927_p6 }
 0x10e   : > { %3935 = shalt.err (!%p3932_p9)
}
 0x10f   : > { %s3936_s0 = scalar_lea.vmem %s777_s22, 16  ;;  %s3943_s16 = scalar_lea.vmem %s777_s22, 32 }
 0x110   : > { %p3937_p10 = scmp.ne.s32.totalorder %s777_s22, %s3936_s0  ;;  %p3944_p4 = scmp.lt.s32.totalorder %s777_s22, %s777_s22 }
 0x111   : > { %p3945_p7 = scmp.lt.s32.totalorder %s3943_s16, %s3936_s0 }
 0x112   : > { %p3939_p2 = pnand %p3937_p10, %p4262_p0 }
 0x113   : > { %p3946_p8 = por %p3945_p7, %p3944_p4 }
 0x114   : > { %p3940_p3 = pneg %p3939_p2 }
 0x116   : > { %p3947_p11 = pnand %p3946_p8, %p3940_p3 }
 0x118   : > { %3950 = shalt.err (!%p3947_p11)
}
 0x119   : > { %3630 = dma.hbm_to_vmem [thread:$0]  (!%p4246_p12), %s4746_s18, 16, %s777_s22, [#allocation16]  }
 0x11a   : > { %p4824_p13 = scmp.ne.s32.totalorder %s4813_s11, 0 }
 0x11b   : > { %p4825_p1 = scmp.eq.s32.totalorder (!%p4824_p13), %s4210_s9, 0 }
 0x11c   : > { %821 = sbr.rel (%p4824_p13) target bundleno = 2339 (0x923), region = 128 }
 0x123   : > { %3996 = dma.done.wait (%p4825_p1), [#allocation4], 16   ;;  %p4826_p0 = pmov %p4825_p1 }
 0x125   : > { %3998 = vsyncadd (%p4826_p0), [#allocation4], 4294967280  ;;  %p4827_p6 = pmov %p4826_p0 }
 0x126   : > { %p4828_p5 = pmov %p4826_p0 }
 0x127   : > { %4000 = dma.done.wait (%p4827_p6), [#allocation7], 32  }
 0x128   : > { %4002 = vsyncadd (%p4828_p5), [#allocation7], 4294967264  ;;  %p4829_p9 = pmov %p4826_p0 }
 0x129   : > { %p4830_p12 = pmov %p4826_p0 }
 0x12a   : > { %4004 = dma.done.wait (%p4829_p9), [#allocation10], 32  }
 0x12b   : > { %4006 = vsyncadd (%p4830_p12), [#allocation10], 4294967264  ;;  %p4831_p10 = pmov %p4826_p0 }
 0x12c   : > { %p4832_p2 = pmov %p4826_p0 }
 0x12d   : > { %4008 = dma.done.wait (%p4831_p10), [#allocation13], 32  }
 0x12e   : > { %4010 = vsyncadd (%p4832_p2), [#allocation13], 4294967264  ;;  %p4833_p3 = pmov %p4826_p0 }
 0x12f   : > { %p4834_p4 = pmov %p4826_p0 }
 0x130   : > { %4012 = dma.done.wait (%p4833_p3), [#allocation16], 32  }
 0x131   : > { %4014 = vsyncadd (%p4834_p4), [#allocation16], 4294967264  ;;  %p925_p7 = scmp.lt.s32.totalorder %s4210_s9, 1  ;;  %s4835_s29 = sld [smem:[#allocation32_spill]]  ;;  %vm932_vm0 = vcmask 130048   ;;  %v4044_v5 = vmov 0.0  }
 0x132   : > { %s4836_s30 = sld [smem:[#allocation33_spill]]  ;;  %933 = vst.msk [vmem:[#allocation2] sm:$0xff] %vm932_vm0, %v4044_v5  ;;  %934 = vst.msk [vmem:[#allocation2 + $0x18] sm:$0xff] %vm932_vm0, %v4044_v5  ;;  %s4838_s2 = sld [smem:[#allocation35_spill]]  ;;  %v3226_v12 = vld [vmem:[#allocation3] ss:$0 sm:$0xff] }
 0x133   : > { %s926_s11 = scalar_select %p925_p7, %s4210_s9, 1  ;;  %v3239_v34 = vld [vmem:[#allocation6] ss:$0 sm:$0xff]  ;;  %v3250_v57 = vld [vmem:[#allocation8] ss:$0 sm:$0xff]  ;;  %vm1574_vm1 = vcmask 64512  }
 0x134   : > { %s4839_s0 = sld [smem:[#allocation37_spill]]  ;;  %s4840_s7 = sld [smem:[#allocation41_spill]]  ;;  %vm2134_vm2 = vcmask 1043456   ;;  %vm2118_vm3 = vcmask 31744   ;;  %vm2605_vm4 = vcmask 1041408   ;;  %vm2589_vm5 = vcmask 15360  }
 0x135   : > { %s3311_s10 = sshll.u32 %s926_s11, 4  ;;  %s4842_s22 = sld [smem:[#allocation39_spill]]  ;;  %vm3034_vm6 = vcmask 130112  }
 0x136   : > { %s4843_s24 = sld [smem:[#allocation43_spill]]  ;;  %s4846_s3 = sld [smem:[#allocation48_spill]] }
 0x137   : > { %s929_s8 = scalar_lea.vmem %s4835_s29, %s3311_s10  ;;  %s4781_s10 = sand.u32 1, %s4025_s4  }
 0x138   : > { %s4837_s1 = smov %s4836_s30  ;;  %v938_v0 = vld [vmem:[%s4836_s30] sm:$0xff]  ;;  %v4471_v4 = vld [vmem:[%s929_s8 + $0x8] sm:$0xff]  ;;  %v3229_v6 = vld [vmem:[%s4838_s2 + $0x10] sm:$0xff]  ;;  %s3223_s5 = sshll.u32 %s4781_s10, 4 }
 0x139   : > { %v939_v1 = vld [vmem:[%s4837_s1 + $0x8] sm:$0xff]  ;;  %v4467_v2 = vld [vmem:[%s929_s8] sm:$0xff]  ;;  %v3230_v7 = vld [vmem:[%s4838_s2 + $0x18] sm:$0xff]  ;;  %s4605_s29 = scalar_lea.vmem [#allocation18], %s3223_s5  ;;  %s4844_s5 = sld [smem:[#allocation46_spill]] }
 0x13a   : > { %v3513_v3 = vpack.c.bf16 %v939_v1, %v938_v0  ;;  %3391 = vmatprep.mubr.msk.f32.mxu0 %vm932_vm0, %v4467_v2  ;;  %v3517_v8 = vpack.c.bf16 %v3230_v7, %v3229_v6  ;;  %v1034_v9 = vld [vmem:[%s4838_s2] sm:$0xff]  ;;  %v1035_v10 = vld [vmem:[%s4838_s2 + $0x8] sm:$0xff]  ;;  %v3240_v28 = vld [vmem:[%s4839_s0 + $0x10] sm:$0xff]  ;;  %s4841_s16 = smov %s4840_s7  ;;  %s4845_s30 = sld [smem:[#allocation47_spill]] }
 0x13b   : > { %v3521_v11 = vpack.c.bf16 %v1035_v10, %v1034_v9  ;;  %v3235_v19 = vld [vmem:[%s4838_s2 + $0x20] sm:$0xff]  ;;  %v3236_v20 = vld [vmem:[%s4838_s2 + $0x28] sm:$0xff]  ;;  %v3241_v29 = vld [vmem:[%s4839_s0 + $0x18] sm:$0xff]  ;;  %s4847_s11 = sld [smem:[#allocation30_spill]]  ;;  %s3312_s8 = sshll.u32 %s4210_s9, 8 }
 0x13c   : > { %3514 = vmatprep.subr.bf16.mxu0 %v3513_v3  ;;  %3518 = vmatprep.subr.bf16.mxu1 %v3517_v8  ;;  %v3525_v22 = vpack.c.bf16 %v3236_v20, %v3235_v19  ;;  %v3529_v30 = vpack.c.bf16 %v3241_v29, %v3240_v28  ;;  %v1306_v31 = vld [vmem:[%s4839_s0] sm:$0xff]  ;;  %v1307_v32 = vld [vmem:[%s4839_s0 + $0x8] sm:$0xff]  ;;  %s3051_s6 = sshll.u32 %s4605_s29, 4  ;;  %s4680_s6 = int_to_ptr.vmem [resolvable:$true] %s3051_s6 }
 0x13d   : > { %3516 = vmatpush3.bf16.msra.mxu0 %v3513_v3  ;;  %3520 = vmatpush3.bf16.msra.mxu1 %v3517_v8  ;;  %v3533_v33 = vpack.c.bf16 %v1307_v32, %v1306_v31  ;;  %v3246_v41 = vld [vmem:[%s4839_s0 + $0x20] sm:$0xff]  ;;  %v3247_v42 = vld [vmem:[%s4839_s0 + $0x28] sm:$0xff]  ;;  %s4850_s0 = sand.u32 1, %s4025_s4   ;;  %s3951_s9 = scalar_lea.vmem %s4680_s6, 256 }
 0x13e   : > { %3522 = vmatprep.subr.bf16.mxu1 %v3521_v11  ;;  %3530 = vmatprep.subr.bf16.mxu0 %v3529_v30  ;;  %v3537_v44 = vpack.c.bf16 %v3247_v42, %v3246_v41  ;;  %v1844_v47 = vld [vmem:[%s4840_s7] sm:$0xff]  ;;  %v1845_v48 = vld [vmem:[%s4841_s16 + $0x8] sm:$0xff]  ;;  %s4045_s7 = smov 120   ;;  %s4686_s1 = scalar_lea.sflag [#allocation5], %s4850_s0 }
 0x13f   : > { %v3541_v49 = vpack.c.bf16 %v1845_v48, %v1844_v47  ;;  %v3251_v53 = vld [vmem:[%s4842_s22 + $0x8] sm:$0xff]  ;;  %v1579_v55 = vld [vmem:[%s4842_s22] sm:$0xff]  ;;  %3018 = vrot.lane.b32.xlu1 %v4467_v2, %s4045_s7  ;;  %p3952_p8 = scmp.ne.s32.totalorder %s4680_s6, %s3951_s9 }
 0x140   : > { %3392 = vmatmul.mubr.msk.f32.vlgmr.msra.gmra.mrb[0].mxu0 %vm932_vm0, %v4471_v4  ;;  %v3263_v54 = vld [vmem:[%s4843_s24 + $0x8] sm:$0xff]  ;;  %v1940_v56 = vld [vmem:[%s4843_s24] sm:$0xff] }
 0x141   : > { %3532 = vmatpush3.bf16.msra.mxu0 %v3529_v30  ;;  %v3260_v1 = vld [vmem:[#allocation11] ss:$0 sm:$0xff]  ;;  %v4583_v32 = vld [vmem:[%s4753_s25] ss:$0 sm:$0xff]  ;;  %p4851_p11 = scmp.ne.s32.totalorder %s4847_s11, 0 }
 0x142   : > { %3534 = vmatprep.subr.bf16.mxu0 %v3533_v33  ;;  %2998 = vrot.lane.b32.xlu0 %v4583_v32, %s4045_s7 }
 0x143   : > { %3020 = vrot.lane.b32.xlu1 %v4471_v4, %s4045_s7  ;;  %p3953_p13 = pnand %p3952_p8, %p4851_p11 }
 0x145   : > { %p3954_p1 = pneg %p3953_p13 }
 0x213   : > { %v3393_v13 = vpop.f32.mrb[0].mxu0 }
 0x214   : > { %v1024_v14 = vadd.f32 %v3393_v13, %v3226_v12  ;;  %v1018_v15 = vpop.f32.mrb[1].mxu0 }
 0x215   : > { %v1019_v16 = vadd.f32 %v3226_v12, %v1018_v15  ;;  %v3256_v15 = vld [vmem:[%s4842_s22 + $0x10] sm:$0xff] }
 0x216   : > { %v1028_v17 = vmax.f32 %v1024_v14, 0.0 }
 0x217   : > { %v1027_v18 = vmax.f32 %v1019_v16, 0.0 }
 0x218   : > { %1031 = vst.msk [vmem:[#allocation2 + $0x10] sm:$0xff] %vm932_vm0, %v1028_v17 }
 0x219   : > { %1030 = vst.msk [vmem:[#allocation2 + $0x8] sm:$0xff] %vm932_vm0, %v1027_v18  ;;  %v2308_v18 = vld [vmem:[%s4743_s15] sm:$0xff] }
 0x21f   : > { %v1037_v23 = vld [vmem:[#allocation2 + $0x10] sm:$0xff] }
 0x220   : > { %v1036_v21 = vld [vmem:[#allocation2 + $0x8] sm:$0xff]  ;;  %v1204_v27 = vld [vmem:[#allocation2 + $0x11] sm:$0xff] }
 0x221   : > { %3398 = vmatprep.mubr.msk.f32.mxu1 %vm932_vm0, %v1036_v21  ;;  %v1032_v24 = vld [vmem:[#allocation2 + $0x7] sm:$0xff]  ;;  %v1033_v25 = vld [vmem:[#allocation2 + $0xf] sm:$0xff] }
 0x222   : > { %3399 = vmatmul.mubr.msk.f32.vlgmr.msra.gmra.mrb[0].mxu1 %vm932_vm0, %v1037_v23  ;;  %v1203_v26 = vld [vmem:[#allocation2 + $0x9] sm:$0xff]  ;;  %v3269_v21 = vld [vmem:[%s4741_s13 + $0x4] sm:$0xf] }
 0x223   : > { %3524 = vmatpush3.bf16.msra.mxu1 %v3521_v11  ;;  %3405 = vmatprep.mubr.msk.f32.mxu1 %vm932_vm0, %v1032_v24  ;;  %v3259_v23 = vld [vmem:[#allocation9] ss:$0 sm:$0xff]  ;;  %v3268_v24 = vld [vmem:[#allocation12] ss:$0 sm:$0xff] }
 0x224   : > { %3526 = vmatprep.subr.bf16.mxu1 %v3525_v22 }
 0x22a   : > { %3406 = vmatmul.mubr.msk.f32.vlgmr.msra.gmra.mrb[0].mxu1 %vm932_vm0, %v1033_v25 }
 0x22b   : > { %3528 = vmatpush3.bf16.msra.mxu1 %v3525_v22  ;;  %3412 = vmatprep.mubr.msk.f32.mxu1 %vm932_vm0, %v1203_v26  ;;  %v2123_v22 = vld [vmem:[%s4741_s13] sm:$0xf] }
 0x22c   : > { %3436 = vmatprep.subr.mxu1 %v3251_v53 }
 0x232   : > { %3413 = vmatmul.mubr.msk.f32.vlgmr.msra.gmra.mrb[0].mxu1 %vm932_vm0, %v1204_v27 }
 0x233   : > { %3437 = vmatpush3.msra.mxu1 %v3251_v53 }
 0x234   : > { %3441 = vmatprep.subr.mxu1 %v1579_v55 }
 0x305   : > { %v3414_v35 = vpop.f32.mrb[0].mxu1 }
 0x306   : > { %v1298_v36 = vadd.f32 %v3414_v35, %v3239_v34  ;;  %v1280_v37 = vpop.f32.mrb[1].mxu1 }
 0x307   : > { %v1297_v38 = vadd.f32 %v3239_v34, %v1280_v37  ;;  %v4588_v37 = vld [vmem:[%s4754_s26] ss:$0 sm:$0xff] }
 0x308   : > { %v1300_v39 = vmax.f32 %v1298_v36, 0.0  ;;  %3003 = vrot.lane.b32.xlu0 %v4588_v37, %s4045_s7  ;;  %s4848_s7 = sld [smem:[#allocation49_spill]] }
 0x309   : > { %v1299_v40 = vmax.f32 %v1297_v38, 0.0 }
 0x30a   : > { %1303 = vst.msk [vmem:[#allocation2 + $0x10] sm:$0xff] %vm932_vm0, %v1300_v39 }
 0x30b   : > { %1302 = vst.msk [vmem:[#allocation2 + $0x8] sm:$0xff] %vm932_vm0, %v1299_v40 }
 0x30e   : > { %s4678_s10 = scalar_lea.hbm %s4848_s7, %s3312_s8 }
 0x311   : > { %v1309_v45 = vld [vmem:[#allocation2 + $0x10] sm:$0xff] }
 0x312   : > { %v1308_v43 = vld [vmem:[#allocation2 + $0x8] sm:$0xff]  ;;  %v1476_v52 = vld [vmem:[#allocation2 + $0x11] sm:$0xff] }
 0x313   : > { %3419 = vmatprep.mubr.msk.f32.mxu0 %vm932_vm0, %v1308_v43  ;;  %v1304_v46 = vld [vmem:[#allocation2 + $0x7] sm:$0xff]  ;;  %v1305_v50 = vld [vmem:[#allocation2 + $0xf] sm:$0xff] }
 0x314   : > { %3420 = vmatmul.mubr.msk.f32.vlgmr.msra.gmra.mrb[2].mxu0 %vm932_vm0, %v1309_v45  ;;  %v1475_v51 = vld [vmem:[#allocation2 + $0x9] sm:$0xff] }
 0x315   : > { %3536 = vmatpush3.bf16.msra.mxu0 %v3533_v33  ;;  %3426 = vmatprep.mubr.msk.f32.mxu0 %vm932_vm0, %v1304_v46 }
 0x316   : > { %3538 = vmatprep.subr.bf16.mxu0 %v3537_v44 }
 0x31c   : > { %3427 = vmatmul.mubr.msk.f32.vlgmr.msra.gmra.mrb[2].mxu0 %vm932_vm0, %v1305_v50 }
 0x31d   : > { %3540 = vmatpush3.bf16.msra.mxu0 %v3537_v44  ;;  %3433 = vmatprep.mubr.msk.f32.mxu0 %vm932_vm0, %v1475_v51 }
 0x31e   : > { %3542 = vmatprep.subr.bf16.mxu0 %v3541_v49 }
 0x324   : > { %3434 = vmatmul.mubr.msk.f32.vlgmr.msra.gmra.mrb[2].mxu0 %vm932_vm0, %v1476_v52 }
 0x325   : > { %3544 = vmatpush3.bf16.msra.mxu0 %v3541_v49  ;;  %3455 = vmatprep.mubr.msk.f32.mxu0 %vm932_vm0, %v1299_v40 }
 0x326   : > { %3458 = vmatprep.subr.mxu0 %v3263_v54 }
 0x328   : > { %3456 = vmatmul.mubr.msk.f32.vlgmr.msra.gmra.mrb[4].mxu0 %vm932_vm0, %v1300_v39 }
 0x329   : > { %3459 = vmatpush3.msra.mxu0 %v3263_v54 }
 0x32a   : > { %3463 = vmatprep.subr.mxu0 %v1940_v56 }
 0x3f7   : > { %v3435_v58 = vpop.f32.mrb[2].mxu0 }
 0x3f8   : > { %v1570_v59 = vadd.f32 %v3435_v58, %v3250_v57  ;;  %v1552_v60 = vpop.f32.mrb[3].mxu0 }
 0x3f9   : > { %v1569_v61 = vadd.f32 %v3250_v57, %v1552_v60 }
 0x3fa   : > { %v1572_v62 = vmax.f32 %v1570_v59, 0.0 }
 0x3fb   : > { %v1571_v63 = vmax.f32 %v1569_v61, 0.0  ;;  %v3457_v0 = vpop.f32.mrb[4].mxu0  ;;  %v3280_v61 = vld [vmem:[%s4745_s17 + $0x4] sm:$0xf] }
 0x3fc   : > { %v1924_v3 = vpop.f32.mrb[5].mxu0  ;;  %1576 = vst.msk [vmem:[#allocation2 + $0x10] sm:$0xff] %vm1574_vm1, %v1572_v62  ;;  %v1930_v5 = vadd.f32 %v3457_v0, %v3260_v1  ;;  %v2405_v62 = vld [vmem:[%s4745_s17] sm:$0xf]  ;;  %v3277_v0 = vld [vmem:[#allocation15] ss:$0 sm:$0xff] }
 0x3fd   : > { %1575 = vst.msk [vmem:[#allocation2 + $0x8] sm:$0xff] %vm1574_vm1, %v1571_v63  ;;  %v1925_v6 = vadd.f32 %v3260_v1, %v1924_v3  ;;  %v3276_v63 = vld [vmem:[#allocation14] ss:$0 sm:$0xff] }
 0x3fe   : > { %v1934_v7 = vmax.f32 %v1930_v5, 0.0 }
 0x3ff   : > { %v1933_v10 = vmax.f32 %v1925_v6, 0.0 }
 0x403   : > { %v1581_v8 = vld [vmem:[#allocation2 + $0x10] sm:$0xff] }
 0x404   : > { %v1747_v9 = vld [vmem:[#allocation2 + $0x11] sm:$0xff]  ;;  %v1580_v11 = vld [vmem:[#allocation2 + $0x8] sm:$0xff] }
 0x405   : > { %v1578_v12 = vld [vmem:[#allocation2 + $0xf] sm:$0xff]  ;;  %3438 = vmatprep.mubr.msk.f32.mxu1 %vm1574_vm1, %v1580_v11  ;;  %v1577_v14 = vld [vmem:[#allocation2 + $0x7] sm:$0xff] }
 0x406   : > { %v1746_v13 = vld [vmem:[#allocation2 + $0x9] sm:$0xff]  ;;  %3439 = vmatmul.mubr.msk.f32.vlgmr.msra.gmra.mrb[2].mxu1 %vm1574_vm1, %v1581_v8 }
 0x407   : > { %1937 = vst.msk [vmem:[#allocation2 + $0x10] sm:$0xff] %vm1574_vm1, %v1934_v7  ;;  %1936 = vst.msk [vmem:[#allocation2 + $0x8] sm:$0xff] %vm1574_vm1, %v1933_v10  ;;  %3443 = vmatprep.mubr.msk.f32.mxu1 %vm1574_vm1, %v1577_v14  ;;  %3442 = vmatpush3.msra.mxu1 %v1579_v55 }
 0x408   : > { %3446 = vmatprep.subr.mxu1 %v3256_v15 }
 0x40e   : > { %v1942_v16 = vld [vmem:[#allocation2 + $0x10] sm:$0xff]  ;;  %v1941_v17 = vld [vmem:[#allocation2 + $0x8] sm:$0xff]  ;;  %3444 = vmatmul.mubr.msk.f32.vlgmr.msra.gmra.mrb[2].mxu1 %vm1574_vm1, %v1578_v12 }
 0x40f   : > { %3460 = vmatprep.mubr.msk.f32.mxu0 %vm1574_vm1, %v1941_v17  ;;  %3448 = vmatprep.mubr.msk.f32.mxu1 %vm1574_vm1, %v1746_v13  ;;  %v1938_v19 = vld [vmem:[#allocation2 + $0x7] sm:$0xff]  ;;  %v1939_v20 = vld [vmem:[#allocation2 + $0xf] sm:$0xff]  ;;  %v2779_v17 = vld [vmem:[%s4749_s21] sm:$0xf] }
 0x410   : > { %3461 = vmatmul.mubr.msk.f32.vlgmr.msra.gmra.mrb[6].mxu0 %vm1574_vm1, %v1942_v16  ;;  %3447 = vmatpush3.msra.mxu1 %v3256_v15 }
 0x411   : > { %3464 = vmatpush3.msra.mxu0 %v1940_v56  ;;  %3465 = vmatprep.mubr.msk.f32.mxu0 %vm1574_vm1, %v1938_v19 }
 0x412   : > { %3478 = vmatprep.subr.mxu0 %v2308_v18  ;;  %3468 = vmatprep.subr.msk.mxu1 %vm2134_vm2, %v3269_v21 }
 0x416   : > { %3449 = vmatmul.mubr.msk.f32.vlgmr.msra.gmra.mrb[2].mxu1 %vm1574_vm1, %v1747_v9 }
 0x417   : > { %3469 = vmatpush3.msk.msra.mxu1 %vm2134_vm2, %v3269_v21  ;;  %v2594_v21 = vld [vmem:[%s4747_s19] sm:$0x3] }
 0x418   : > { %3466 = vmatmul.mubr.msk.f32.vlgmr.msra.gmra.mrb[6].mxu0 %vm1574_vm1, %v1939_v20  ;;  %3473 = vmatprep.subr.msk.mxu1 %vm2134_vm2, %v2123_v22  ;;  %v3288_v20 = vld [vmem:[%s4747_s19 + $0x2] sm:$0x3] }
 0x419   : > { %3480 = vmatprep.mubr.msk.f32.mxu0 %vm1574_vm1, %v1933_v10  ;;  %3479 = vmatpush3.msra.mxu0 %v2308_v18 }
 0x41a   : > { %3483 = vmatprep.subr.msk.mxu0 %vm2134_vm2, %v3280_v61 }
 0x41c   : > { %3481 = vmatmul.mubr.msk.f32.vlgmr.msra.gmra.mrb[8].mxu0 %vm1574_vm1, %v1934_v7 }
 0x41d   : > { %3484 = vmatpush3.msk.msra.mxu0 %vm2134_vm2, %v3280_v61 }
 0x41e   : > { %3488 = vmatprep.subr.msk.mxu0 %vm2134_vm2, %v2405_v62 }
 0x4e9   : > { %v3450_v25 = vpop.f32.mrb[2].mxu1 }
 0x4ea   : > { %v1840_v26 = vadd.f32 %v3450_v25, %v3259_v23  ;;  %v1822_v28 = vpop.f32.mrb[3].mxu1 }
 0x4eb   : > { %v3467_v27 = vpop.f32.mrb[6].mxu0  ;;  %v1839_v30 = vadd.f32 %v3259_v23, %v1822_v28 }
 0x4ec   : > { %v2114_v29 = vadd.f32 %v3467_v27, %v3268_v24  ;;  %v2098_v31 = vpop.f32.mrb[7].mxu0  ;;  %v1842_v33 = vmax.f32 %v1840_v26, 0.0 }
 0x4ed   : > { %v2113_v34 = vadd.f32 %v3268_v24, %v2098_v31  ;;  %v1841_v36 = vmax.f32 %v1839_v30, 0.0 }
 0x4ee   : > { %v2116_v35 = vmax.f32 %v2114_v29, 0.0  ;;  %v2975_v40 = vmul.f32 %v4583_v32, %v1842_v33 }
 0x4ef   : > { %v2115_v38 = vmax.f32 %v2113_v34, 0.0  ;;  %v3482_v39 = vpop.f32.mrb[8].mxu0  ;;  %v2974_v42 = vmul.f32 %v4583_v32, %v1841_v36  ;;  %v2875_v36 = vld [vmem:[%s4751_s23] sm:$0x3] }
 0x4f0   : > { %v2387_v41 = vpop.f32.mrb[9].mxu0  ;;  %2120 = vst.msk [vmem:[#allocation2 + $0x10] sm:$0xff] %vm2118_vm3, %v2116_v35  ;;  %v2983_v43 = vadd.f32 %v4588_v37, %v2975_v40  ;;  %v2393_v7 = vadd.f32 %v3482_v39, %v3277_v0  ;;  %v3296_v39 = vld [vmem:[%s4845_s30] ss:$0 sm:$0xff]  ;;  %s4047_s30 = smov [#allocation18]  }
 0x4f1   : > { %2119 = vst.msk [vmem:[#allocation2 + $0x8] sm:$0xff] %vm2118_vm3, %v2115_v38  ;;  %v2982_v44 = vadd.f32 %v4588_v37, %v2974_v42  ;;  %v2388_v9 = vadd.f32 %v3277_v0, %v2387_v41  ;;  %v3295_v38 = vld [vmem:[%s4844_s5] ss:$0 sm:$0xff]  ;;  %s4784_s5 = smov 8   ;;  %s3955_s8 = sshll.u32 %s4047_s30, 4  ;;  %s3956_s8 = int_to_ptr.vmem [resolvable:$false] %s3955_s8 }
 0x4f2   : > { %v2985_v45 = vadd.f32 3.0, %v2983_v43  ;;  %s3957_s28 = scalar_lea.vmem %s3956_s8, 512  ;;  %p3958_p0 = scmp.lt.s32.totalorder %s4680_s6, %s3956_s8 }
 0x4f3   : > { %v2984_v46 = vadd.f32 3.0, %v2982_v44  ;;  %p3959_p6 = scmp.lt.s32.totalorder %s3957_s28, %s3951_s9 }
 0x4f4   : > { %v2987_v47 = vmax.f32 %v2985_v45, 0.0 }
 0x4f5   : > { %v2986_v48 = vmax.f32 %v2984_v46, 0.0  ;;  %p3960_p5 = por %p3959_p6, %p3958_p0 }
 0x4f6   : > { %v2989_v49 = vmin.f32 %v2987_v47, 6.0 }
 0x4f7   : > { %v2988_v51 = vmin.f32 %v2986_v48, 6.0  ;;  %v2125_v52 = vld [vmem:[#allocation2 + $0x10] sm:$0xff]  ;;  %v3300_v48 = vld [vmem:[%s4846_s3] ss:$0 sm:$0xff]  ;;  %s4849_s3 = smov %s4848_s7  ;;  %p3961_p9 = pnand %p3960_p5, %p3954_p1 }
 0x4f8   : > { %v2124_v50 = vld [vmem:[#allocation2 + $0x8] sm:$0xff]  ;;  %v2991_v53 = vmul.f32 %v2989_v49, %v2983_v43  ;;  %v2999_v49 = vpop.permute.xlu0 %2998 }
 0x4f9   : > { %3470 = vmatprep.mubr.msk.f32.mxu1 %vm2118_vm3, %v2124_v50  ;;  %v2121_v54 = vld [vmem:[#allocation2 + $0x7] sm:$0xff]  ;;  %v2990_v55 = vmul.f32 %v2988_v51, %v2982_v44  ;;  %v2122_v60 = vld [vmem:[#allocation2 + $0xf] sm:$0xff] }
 0x4fa   : > { %3471 = vmatmul.mubr.msk.f32.vlgmr.msra.gmra.mrb[4].mxu1 %vm2118_vm3, %v2125_v52  ;;  %v2993_v56 = vmul.f32 0.16666667, %v2991_v53 }
 0x4fb   : > { %3474 = vmatpush3.msk.msra.mxu1 %vm2134_vm2, %v2123_v22  ;;  %3475 = vmatprep.mubr.msk.f32.mxu1 %vm2118_vm3, %v2121_v54  ;;  %v2992_v57 = vmul.f32 0.16666667, %v2990_v55  ;;  %v3287_v22 = vld [vmem:[#allocation17] ss:$0 sm:$0xff] }
 0x4fc   : > { %v2995_v58 = vadd.f32 %v2993_v56, %v4471_v4  ;;  %3493 = vmatprep.subr.msk.mxu1 %vm2605_vm4, %v3288_v20  ;;  %v3004_v56 = vpop.permute.xlu0 %3003 }
 0x4fd   : > { %v2994_v59 = vadd.f32 %v2992_v57, %v4467_v2 }
 0x4fe   : > { %2997 = vst.msk [vmem:[%s4605_s29 + $0x8] sm:$0xff] %vm1574_vm1, %v2995_v58 }
 0x4ff   : > { %2996 = vst.msk [vmem:[%s4605_s29] sm:$0xff] %vm1574_vm1, %v2994_v59 }
 0x502   : > { %3476 = vmatmul.mubr.msk.f32.vlgmr.msra.gmra.mrb[4].mxu1 %vm2118_vm3, %v2122_v60 }
 0x503   : > { %3494 = vmatpush3.msk.msra.mxu1 %vm2605_vm4, %v3288_v20 }
 0x504   : > { %3498 = vmatprep.subr.msk.mxu1 %vm2605_vm4, %v2594_v21 }
 0x5d5   : > { %v3477_v1 = vpop.f32.mrb[4].mxu1 }
 0x5d6   : > { %v2304_v3 = vadd.f32 %v3477_v1, %v3276_v63  ;;  %v2288_v5 = vpop.f32.mrb[5].mxu1 }
 0x5d7   : > { %v2303_v6 = vadd.f32 %v3276_v63, %v2288_v5  ;;  %v3019_v63 = vpop.permute.xlu1 %3018 }
 0x5d8   : > { %v2306_v8 = vmax.f32 %v2304_v3, 0.0 }
 0x5d9   : > { %v2305_v10 = vmax.f32 %v2303_v6, 0.0 }
 0x5da   : > { %v2397_v11 = vadd.f32 %v2393_v7, %v2306_v8 }
 0x5db   : > { %v2396_v12 = vadd.f32 %v2388_v9, %v2305_v10  ;;  %v3021_v8 = vpop.permute.xlu1 %3020 }
 0x5dc   : > { %v2399_v13 = vmax.f32 %v2397_v11, 0.0 }
 0x5dd   : > { %v2398_v14 = vmax.f32 %v2396_v12, 0.0 }
 0x5de   : > { %2402 = vst.msk [vmem:[#allocation2 + $0x10] sm:$0xff] %vm2118_vm3, %v2399_v13 }
 0x5df   : > { %2401 = vst.msk [vmem:[#allocation2 + $0x8] sm:$0xff] %vm2118_vm3, %v2398_v14 }
 0x5e5   : > { %v2407_v16 = vld [vmem:[#allocation2 + $0x10] sm:$0xff] }
 0x5e6   : > { %v2406_v15 = vld [vmem:[#allocation2 + $0x8] sm:$0xff] }
 0x5e7   : > { %3485 = vmatprep.mubr.msk.f32.mxu0 %vm2118_vm3, %v2406_v15  ;;  %v2403_v18 = vld [vmem:[#allocation2 + $0x6] sm:$0xff]  ;;  %v2404_v19 = vld [vmem:[#allocation2 + $0xe] sm:$0xff] }
 0x5e8   : > { %3486 = vmatmul.mubr.msk.f32.vlgmr.msra.gmra.mrb[10].mxu0 %vm2118_vm3, %v2407_v16 }
 0x5e9   : > { %3489 = vmatpush3.msk.msra.mxu0 %vm2134_vm2, %v2405_v62  ;;  %3490 = vmatprep.mubr.msk.f32.mxu0 %vm2118_vm3, %v2403_v18 }
 0x5ea   : > { %3503 = vmatprep.subr.msk.mxu0 %vm2134_vm2, %v2779_v17 }
 0x5f0   : > { %3491 = vmatmul.mubr.msk.f32.vlgmr.msra.gmra.mrb[10].mxu0 %vm2118_vm3, %v2404_v19 }
 0x5f1   : > { %3505 = vmatprep.mubr.msk.f32.mxu0 %vm2118_vm3, %v2398_v14  ;;  %3504 = vmatpush3.msk.msra.mxu0 %vm2134_vm2, %v2779_v17 }
 0x5f4   : > { %3506 = vmatmul.mubr.msk.f32.vlgmr.msra.gmra.mrb[12].mxu0 %vm2118_vm3, %v2399_v13 }
 0x6c3   : > { %v3492_v23 = vpop.f32.mrb[10].mxu0 }
 0x6c4   : > { %v2585_v24 = vadd.f32 %v3492_v23, %v3287_v22  ;;  %v2569_v25 = vpop.f32.mrb[11].mxu0 }
 0x6c5   : > { %v2584_v26 = vadd.f32 %v3287_v22, %v2569_v25 }
 0x6c6   : > { %v2587_v27 = vmax.f32 %v2585_v24, 0.0 }
 0x6c7   : > { %v2586_v28 = vmax.f32 %v2584_v26, 0.0  ;;  %v3507_v29 = vpop.f32.mrb[12].mxu0 }
 0x6c8   : > { %v2861_v30 = vpop.f32.mrb[13].mxu0  ;;  %2591 = vst.msk [vmem:[#allocation2 + $0x10] sm:$0xff] %vm2589_vm5, %v2587_v27  ;;  %v2867_v44 = vadd.f32 %v3507_v29, %v3296_v39 }
 0x6c9   : > { %2590 = vst.msk [vmem:[#allocation2 + $0x8] sm:$0xff] %vm2589_vm5, %v2586_v28  ;;  %v2862_v45 = vadd.f32 %v3296_v39, %v2861_v30 }
 0x6cf   : > { %v2596_v33 = vld [vmem:[#allocation2 + $0x10] sm:$0xff] }
 0x6d0   : > { %v2595_v31 = vld [vmem:[#allocation2 + $0x8] sm:$0xff] }
 0x6d1   : > { %3495 = vmatprep.mubr.msk.f32.mxu1 %vm2589_vm5, %v2595_v31  ;;  %v2592_v34 = vld [vmem:[#allocation2 + $0x6] sm:$0xff]  ;;  %v2593_v35 = vld [vmem:[#allocation2 + $0xe] sm:$0xff] }
 0x6d2   : > { %3496 = vmatmul.mubr.msk.f32.vlgmr.msra.gmra.mrb[6].mxu1 %vm2589_vm5, %v2596_v33 }
 0x6d3   : > { %3499 = vmatpush3.msk.msra.mxu1 %vm2605_vm4, %v2594_v21  ;;  %3500 = vmatprep.mubr.msk.f32.mxu1 %vm2589_vm5, %v2592_v34 }
 0x6d4   : > { %3508 = vmatprep.subr.msk.mxu1 %vm2605_vm4, %v2875_v36 }
 0x6da   : > { %3501 = vmatmul.mubr.msk.f32.vlgmr.msra.gmra.mrb[6].mxu1 %vm2589_vm5, %v2593_v35 }
 0x6db   : > { %3509 = vmatpush3.msk.msra.mxu1 %vm2605_vm4, %v2875_v36 }
 0x7ad   : > { %v3502_v40 = vpop.f32.mrb[6].mxu1 }
 0x7ae   : > { %v2775_v41 = vadd.f32 %v3502_v40, %v3295_v38  ;;  %v2759_v42 = vpop.f32.mrb[7].mxu1 }
 0x7af   : > { %v2774_v43 = vadd.f32 %v3295_v38, %v2759_v42 }
 0x7b0   : > { %v2777_v32 = vmax.f32 %v2775_v41, 0.0 }
 0x7b1   : > { %v2776_v2 = vmax.f32 %v2774_v43, 0.0 }
 0x7b2   : > { %v2871_v46 = vadd.f32 %v2867_v44, %v2777_v32 }
 0x7b3   : > { %v2870_v37 = vadd.f32 %v2862_v45, %v2776_v2 }
 0x7b4   : > { %v2873_v4 = vmax.f32 %v2871_v46, 0.0 }
 0x7b5   : > { %v2872_v47 = vmax.f32 %v2870_v37, 0.0 }
 0x7b7   : > { %3510 = vmatprep.mubr.msk.f32.mxu1 %vm2589_vm5, %v2872_v47 }
 0x7b8   : > { %3511 = vmatmul.mubr.msk.f32.vlgmr.msra.gmra.mrb[8].mxu1 %vm2589_vm5, %v2873_v4 }
 0x88b   : > { %v3512_v50 = vpop.f32.mrb[8].mxu1 }
 0x88c   : > { %v2963_v51 = vadd.f32 %v3512_v50, %v3300_v48  ;;  %v2957_v52 = vpop.f32.mrb[9].mxu1 }
 0x88d   : > { %v2958_v53 = vadd.f32 %v3300_v48, %v2957_v52 }
 0x88e   : > { %v2967_v54 = vmax.f32 %v2963_v51, 0.0 }
 0x88f   : > { %v2966_v55 = vmax.f32 %v2958_v53, 0.0 }
 0x890   : > { %v3002_v57 = vmul.f32 %v2999_v49, %v2967_v54 }
 0x891   : > { %v3001_v58 = vmul.f32 %v2999_v49, %v2966_v55 }
 0x892   : > { %v3007_v59 = vadd.f32 %v3004_v56, %v3002_v57 }
 0x893   : > { %v3006_v60 = vadd.f32 %v3004_v56, %v3001_v58 }
 0x894   : > { %v3009_v61 = vadd.f32 3.0, %v3007_v59 }
 0x895   : > { %v3008_v62 = vadd.f32 3.0, %v3006_v60 }
 0x896   : > { %v3011_v0 = vmax.f32 %v3009_v61, 0.0 }
 0x897   : > { %v3010_v1 = vmax.f32 %v3008_v62, 0.0 }
 0x898   : > { %v3013_v3 = vmin.f32 %v3011_v0, 6.0 }
 0x899   : > { %v3012_v5 = vmin.f32 %v3010_v1, 6.0 }
 0x89a   : > { %v3015_v6 = vmul.f32 %v3013_v3, %v3007_v59 }
 0x89b   : > { %v3014_v7 = vmul.f32 %v3012_v5, %v3006_v60 }
 0x89c   : > { %v3017_v9 = vmul.f32 0.16666667, %v3015_v6 }
 0x89d   : > { %v3016_v10 = vmul.f32 0.16666667, %v3014_v7 }
 0x89e   : > { %v3025_v11 = vadd.f32 %v3021_v8, %v3017_v9 }
 0x89f   : > { %v3024_v12 = vadd.f32 %v3019_v63, %v3016_v10 }
 0x8a0   : > { %3030 = vrot.lane.b32.xlu1 %v3025_v11, %s4784_s5 }
 0x8a1   : > { %3028 = vrot.lane.b32.xlu0 %v3024_v12, %s4784_s5 }
 0x912   : > { %v3031_v13 = vpop.permute.xlu1 %3030 }
 0x913   : > { %3036 = vst.msk [vmem:[%s4605_s29 + $0x8] sm:$0xff] %vm3034_vm6, %v3031_v13  ;;  %v3029_v14 = vpop.permute.xlu0 %3028 }
 0x914   : > { %3035 = vst.msk [vmem:[%s4605_s29] sm:$0xff] %vm3034_vm6, %v3029_v14 }
 0x915   : > { %3964 = shalt.err (!%p3961_p9)
}
 0x916   : > { %s3965_s0 = scalar_lea.hbm %s4678_s10, 256  ;;  %s3969_s30 = scalar_lea.hbm %s4849_s3, 512 }
 0x917   : > { %p3966_p12 = scmp.ne.s32.totalorder %s4678_s10, %s3965_s0  ;;  %p3970_p3 = scmp.lt.u32.totalorder %s4678_s10, %s4849_s3 }
 0x918   : > { %p3971_p4 = scmp.lt.u32.totalorder %s3969_s30, %s3965_s0  ;;  %p3973_p8 = scmp.lt.u32.totalorder %s3965_s0, %s4678_s10 }
 0x919   : > { %p3967_p10 = pnand %p3966_p12, %p4851_p11 }
 0x91a   : > { %p3972_p7 = por %p3971_p4, %p3970_p3 }
 0x91b   : > { %p3968_p2 = pneg %p3967_p10 }
 0x91c   : > { %p3974_p13 = por %p3973_p8, %p3972_p7 }
 0x91e   : > { %p3975_p1 = pnand %p3974_p13, %p3968_p2 }
 0x920   : > { %3978 = shalt.err (!%p3975_p1)
}
 0x921   : > { %s4048_s9 = smov 128   ;;  %s4852_s28 = smov 8  }
 0x922   : > { %3601 = dma.vmem_to_hbm [thread:$0]  (%p4851_p11), %s4680_s6, 256, %s4678_s10, %s4686_s1, %s4048_s9, %s4048_s9, %s4852_s28  }
 0x923 PF: > { %s4853_s29 = sld [smem:[#allocation27_spill]]  ;;  %s4854_s7 = sld [smem:[#allocation25_spill]] }
 0x924   : > { %s4855_s2 = sld [smem:[#allocation31_spill]] }
 0x929   : > { %p3653_p0 = scmp.ge.s32.totalorder %s4853_s29, 2  ;;  %s3066_s5 = sand.u32 1, %s4854_s7  }
 0x92a   : > { %p4856_p6 = scmp.ne.s32.totalorder %s4855_s2, 0  ;;  %s3067_s0 = scalar_lea.sflag [#allocation5], %s3066_s5 }
 0x92c   : > { %p3632_p5 = pnand %p3653_p0, %p4856_p6 }
 0x92e   : > { %4016 = dma.done.wait (!%p3632_p5), %s3067_s0, 256  }
 0x92f   : > { %4018 = vsyncadd (!%p3632_p5), %s3067_s0, 4294967040  ;;  %s4857_s30 = sld [smem:[#allocation28_spill]]  ;;  %s4858_s8 = sld [smem:[#allocation26_spill]] }
 0x930   : > { %s4859_s11 = sld [smem:[#allocation29_spill]]  ;;  %s4860_s7 = smov %s4025_s4 }
 0x935   : > { %p42_p9 = scmp.ge.s32.totalorder %s4857_s30, 4   ;;  %s4861_s4 = smov %s4858_s8 }
 0x936   : > { %s4862_s8 = smov %s4859_s11 }
 0x937   :  { %44 = sbr.rel (!%p42_p9) target bundleno = 27 (0x1b), region = 210 }
 0x93e   :  { %3072 = vsyncpa [#allocation4], 1 }
 0x93f   :  { %3074 = vsyncpa [#allocation4 + $0x1], 1 }
 0x940   :  { %3075 = vsyncpa [#allocation7], 1 }
 0x941   :  { %3076 = vsyncpa [#allocation10], 1 }
 0x942   :  { %3077 = vsyncpa [#allocation13], 1 }
 0x943   :  { %3078 = vsyncpa [#allocation16], 1 }
 0x944   :  { %3079 = vsyncpa [#allocation5], 1 }
 0x945   :  { %3081 = vsyncpa [#allocation5 + $0x1], 1 }

</bundles_post_ra>
